<compile_context>
chip_gen: v6e
topology: v6e:2x2x1
jax: 0.10.0
libtpu: 0.0.40
codegen_flags: <defaults>
</compile_context>

<pallas_src>
import math

import jax
import jax.numpy as jnp
from jax import lax
from jax.experimental import pallas as pl
from jax.experimental.pallas import tpu as pltpu

# ----------------------------- config (small) ------------------------------
INPUT_DIM = 32
EMBED_DIM = 32
NUM_HEADS = 4
NUM_LAYERS = 2
FF_DIM = EMBED_DIM * 4
MAX_POS = 600
LN_EPS = 1e-5
HEAD_DIM = EMBED_DIM // NUM_HEADS
PRED_PAD = 128                    # lane-dense padded predictor width
PER_LAYER_REFS = 12               # refs per encoder layer


# ----------------------------- fused kernel --------------------------------
def _layer_norm(x, g, b):
    mu = jnp.mean(x, axis=-1, keepdims=True)
    xc = x - mu
    var = jnp.mean(xc * xc, axis=-1, keepdims=True)
    return xc * lax.rsqrt(var + LN_EPS) * g + b


def _model_kernel(feat_ref, pos_ref, maskb_ref, pos_tab_ref,
                  emb_w_ref, emb_b_ref, *rest):
    # rest = 24 per-layer refs, pred_w, pred_b, output ref
    layer_refs = rest[:NUM_LAYERS * PER_LAYER_REFS]
    pred_w_ref = rest[NUM_LAYERS * PER_LAYER_REFS]
    pred_b_ref = rest[NUM_LAYERS * PER_LAYER_REFS + 1]
    o_ref = rest[NUM_LAYERS * PER_LAYER_REFS + 2]

    L = feat_ref.shape[0]
    E = EMBED_DIM
    dh = HEAD_DIM
    scale = 1.0 / math.sqrt(dh)

    # ---- input embedding + positional embedding (one-hot gather on MXU) ----
    x = jnp.dot(feat_ref[...], emb_w_ref[...],
                preferred_element_type=jnp.float32) + emb_b_ref[...]
    pos = pos_ref[...]                                        # (L, 1) int32
    iota = lax.broadcasted_iota(jnp.int32, (L, MAX_POS), 1)
    one_hot = jnp.where(iota == pos, 1.0, 0.0).astype(jnp.float32)
    x = x + jnp.dot(one_hot, pos_tab_ref[...],
                    preferred_element_type=jnp.float32)       # (L, E)

    mask_b = maskb_ref[...]                                   # (1, L) key bias

    # ---- encoder layers (post-norm, ReLU FFN, eval/no-dropout) -------------
    for layer in range(NUM_LAYERS):
        lr = layer_refs[layer * PER_LAYER_REFS:(layer + 1) * PER_LAYER_REFS]
        (in_w, in_b, out_w, out_b, ff1_w, ff1_b, ff2_w, ff2_b,
         ln1_g, ln1_b, ln2_g, ln2_b) = [r[...] for r in lr]

        # multi-head self-attention: one wide QKV matmul, heads split in-kernel
        qkv = jnp.dot(x, in_w, preferred_element_type=jnp.float32) + in_b
        heads = []
        for h in range(NUM_HEADS):
            q_h = qkv[:, h * dh:(h + 1) * dh]                 # (L, dh)
            k_h = qkv[:, E + h * dh:E + (h + 1) * dh]
            v_h = qkv[:, 2 * E + h * dh:2 * E + (h + 1) * dh]
            s = jnp.dot(q_h, k_h.T,
                        preferred_element_type=jnp.float32) * scale
            s = s + mask_b                                    # key-padding bias
            s = s - jnp.max(s, axis=-1, keepdims=True)
            pexp = jnp.exp(s)
            pexp = pexp * pl.reciprocal(
                jnp.sum(pexp, axis=-1, keepdims=True), approx=True)
            heads.append(jnp.dot(pexp, v_h,
                                 preferred_element_type=jnp.float32))
        attn = jnp.concatenate(heads, axis=1)                 # (L, E)
        attn = jnp.dot(attn, out_w,
                       preferred_element_type=jnp.float32) + out_b

        x = _layer_norm(x + attn, ln1_g, ln1_b)

        h1 = jnp.maximum(
            jnp.dot(x, ff1_w, preferred_element_type=jnp.float32) + ff1_b, 0.0)
        h2 = jnp.dot(h1, ff2_w, preferred_element_type=jnp.float32) + ff2_b
        x = _layer_norm(x + h2, ln2_g, ln2_b)

    # ---- coordinate predictor (lane-dense 128-wide) + boundary overwrite ---
    coords = jnp.dot(x, pred_w_ref[...],
                     preferred_element_type=jnp.float32) + pred_b_ref[...]
    row = lax.broadcasted_iota(jnp.int32, (L, PRED_PAD), 0)
    col = lax.broadcasted_iota(jnp.int32, (L, PRED_PAD), 1)
    coords = jnp.where(row == 0, 0.0, coords)                 # [0, 0]
    coords = jnp.where(row == L - 1,
                       jnp.where(col == 0, 600.0, 0.0), coords)  # [600, 0]
    o_ref[...] = coords


# ----------------------------- wrapper --------------------------------------
def coordinate_transformer_forward(params, features, positions, mask):
    """Mirrors CoordinateTransformer.forward (inference / eval mode)."""
    B, L, Din = features.shape
    E = EMBED_DIM

    # key-padding mask: mask=True means valid; padded keys get a -1e9 bias
    mask_bias = jnp.where(mask, 0.0, -1e9).astype(jnp.float32).reshape(B, 1, L)
    pos = positions.astype(jnp.int32).reshape(B, L, 1)

    # zero-pad predictor to 128 output lanes (real outputs in first 2 columns)
    pred_w_pad = jnp.zeros((E, PRED_PAD), jnp.float32).at[:, :2].set(
        params["pred_w"])
    pred_b_pad = jnp.zeros((1, PRED_PAD), jnp.float32).at[:, :2].set(
        params["pred_b"].reshape(1, 2))

    def full_spec(a):
        return pl.BlockSpec(a.shape, lambda b, _nd=a.ndim: (0,) * _nd)

    args = [features, pos, mask_bias, params["pos_emb"],
            params["emb_w"], params["emb_b"].reshape(1, E)]
    in_specs = [
        pl.BlockSpec((None, L, Din), lambda b: (b, 0, 0)),
        pl.BlockSpec((None, L, 1), lambda b: (b, 0, 0)),
        pl.BlockSpec((None, 1, L), lambda b: (b, 0, 0)),
    ]
    in_specs += [full_spec(a) for a in args[3:]]

    for lp in params["layers"]:
        layer_args = [
            lp["in_w"], lp["in_b"].reshape(1, -1),
            lp["out_w"], lp["out_b"].reshape(1, -1),
            lp["ff1_w"], lp["ff1_b"].reshape(1, -1),
            lp["ff2_w"], lp["ff2_b"].reshape(1, -1),
            lp["ln1_g"].reshape(1, -1), lp["ln1_b"].reshape(1, -1),
            lp["ln2_g"].reshape(1, -1), lp["ln2_b"].reshape(1, -1),
        ]
        args += layer_args
        in_specs += [full_spec(a) for a in layer_args]

    args += [pred_w_pad, pred_b_pad]
    in_specs += [full_spec(pred_w_pad), full_spec(pred_b_pad)]

    out = pl.pallas_call(
        _model_kernel,
        out_shape=jax.ShapeDtypeStruct((B, L, PRED_PAD), jnp.float32),
        grid=(B,),
        in_specs=in_specs,
        out_specs=pl.BlockSpec((None, L, PRED_PAD), lambda b: (b, 0, 0)),
        compiler_params=pltpu.CompilerParams(
            dimension_semantics=("parallel",)),
    )(*args)

    return out[:, :, :2]                                      # (B, L, 2)


# ----------------------------- parameter init ------------------------------
def init_params(key):
    ks = jax.random.split(key, 4 + NUM_LAYERS)
    scale = 0.02

    def w(k, shape):
        return scale * jax.random.normal(k, shape, dtype=jnp.float32)

    params = {
        "emb_w": w(ks[0], (INPUT_DIM, EMBED_DIM)),
        "emb_b": jnp.zeros((EMBED_DIM,), jnp.float32),
        "pos_emb": w(ks[1], (MAX_POS, EMBED_DIM)),
        "pred_w": w(ks[2], (EMBED_DIM, 2)),
        "pred_b": jnp.zeros((2,), jnp.float32),
        "layers": [],
    }
    for i in range(NUM_LAYERS):
        lk = jax.random.split(ks[4 + i], 4)
        params["layers"].append({
            "in_w": w(lk[0], (EMBED_DIM, 3 * EMBED_DIM)),   # = in_proj_weight.T
            "in_b": jnp.zeros((3 * EMBED_DIM,), jnp.float32),
            "out_w": w(lk[1], (EMBED_DIM, EMBED_DIM)),
            "out_b": jnp.zeros((EMBED_DIM,), jnp.float32),
            "ff1_w": w(lk[2], (EMBED_DIM, FF_DIM)),
            "ff1_b": jnp.zeros((FF_DIM,), jnp.float32),
            "ff2_w": w(lk[3], (FF_DIM, EMBED_DIM)),
            "ff2_b": jnp.zeros((EMBED_DIM,), jnp.float32),
            "ln1_g": jnp.ones((EMBED_DIM,), jnp.float32),
            "ln1_b": jnp.zeros((EMBED_DIM,), jnp.float32),
            "ln2_g": jnp.ones((EMBED_DIM,), jnp.float32),
            "ln2_b": jnp.zeros((EMBED_DIM,), jnp.float32),
        })
    return params


# ----------------------------- main -----------------------------------------
if __name__ == "__main__":
    B, L = 2, 8
    key = jax.random.PRNGKey(0)
    kf, kp = jax.random.split(key)

    features = jax.random.normal(kf, (B, L, INPUT_DIM), dtype=jnp.float32)
    positions = jnp.broadcast_to(jnp.arange(L, dtype=jnp.int32), (B, L))
    mask = jnp.ones((B, L), dtype=bool).at[1, 5].set(False)  # one padded key

    params = init_params(kp)

    coords = coordinate_transformer_forward(params, features, positions, mask)
    coords = jax.block_until_ready(coords)
    assert coords.shape == (B, L, 2)
    print("KERNEL_OK")
</pallas_src>

<mosaic_0001>
module attributes {stable_mosaic.version = 11 : i64} {
  func.func @_model_kernel(%arg0: i32, %arg1: memref<1x8x32xf32, #tpu.memory_space<vmem>>, %arg2: memref<1x8x1xi32, #tpu.memory_space<vmem>>, %arg3: memref<1x1x8xf32, #tpu.memory_space<vmem>>, %arg4: memref<600x32xf32, #tpu.memory_space<vmem>>, %arg5: memref<32x32xf32, #tpu.memory_space<vmem>>, %arg6: memref<1x32xf32, #tpu.memory_space<vmem>>, %arg7: memref<32x96xf32, #tpu.memory_space<vmem>>, %arg8: memref<1x96xf32, #tpu.memory_space<vmem>>, %arg9: memref<32x32xf32, #tpu.memory_space<vmem>>, %arg10: memref<1x32xf32, #tpu.memory_space<vmem>>, %arg11: memref<32x128xf32, #tpu.memory_space<vmem>>, %arg12: memref<1x128xf32, #tpu.memory_space<vmem>>, %arg13: memref<128x32xf32, #tpu.memory_space<vmem>>, %arg14: memref<1x32xf32, #tpu.memory_space<vmem>>, %arg15: memref<1x32xf32, #tpu.memory_space<vmem>>, %arg16: memref<1x32xf32, #tpu.memory_space<vmem>>, %arg17: memref<1x32xf32, #tpu.memory_space<vmem>>, %arg18: memref<1x32xf32, #tpu.memory_space<vmem>>, %arg19: memref<32x96xf32, #tpu.memory_space<vmem>>, %arg20: memref<1x96xf32, #tpu.memory_space<vmem>>, %arg21: memref<32x32xf32, #tpu.memory_space<vmem>>, %arg22: memref<1x32xf32, #tpu.memory_space<vmem>>, %arg23: memref<32x128xf32, #tpu.memory_space<vmem>>, %arg24: memref<1x128xf32, #tpu.memory_space<vmem>>, %arg25: memref<128x32xf32, #tpu.memory_space<vmem>>, %arg26: memref<1x32xf32, #tpu.memory_space<vmem>>, %arg27: memref<1x32xf32, #tpu.memory_space<vmem>>, %arg28: memref<1x32xf32, #tpu.memory_space<vmem>>, %arg29: memref<1x32xf32, #tpu.memory_space<vmem>>, %arg30: memref<1x32xf32, #tpu.memory_space<vmem>>, %arg31: memref<32x128xf32, #tpu.memory_space<vmem>>, %arg32: memref<1x128xf32, #tpu.memory_space<vmem>>, %arg33: memref<1x8x128xf32, #tpu.memory_space<vmem>>) attributes {dimension_semantics = [#tpu.dimension_semantics<parallel>], iteration_bounds = array<i64: 2>, scalar_prefetch = 0 : i64, scratch_operands = 0 : i64, tpu.core_type = #tpu.core_type<tc>, window_params = [{transform_indices = @transform_0, window_bounds = array<i64: 1, 8, 32>}, {transform_indices = @transform_1, window_bounds = array<i64: 1, 8, 1>}, {transform_indices = @transform_2, window_bounds = array<i64: 1, 1, 8>}, {pipeline_mode = #tpu.pipeline_mode<synchronous>, transform_indices = @transform_3, window_bounds = array<i64: 600, 32>}, {pipeline_mode = #tpu.pipeline_mode<synchronous>, transform_indices = @transform_4, window_bounds = array<i64: 32, 32>}, {pipeline_mode = #tpu.pipeline_mode<synchronous>, transform_indices = @transform_5, window_bounds = array<i64: 1, 32>}, {pipeline_mode = #tpu.pipeline_mode<synchronous>, transform_indices = @transform_6, window_bounds = array<i64: 32, 96>}, {pipeline_mode = #tpu.pipeline_mode<synchronous>, transform_indices = @transform_7, window_bounds = array<i64: 1, 96>}, {pipeline_mode = #tpu.pipeline_mode<synchronous>, transform_indices = @transform_8, window_bounds = array<i64: 32, 32>}, {pipeline_mode = #tpu.pipeline_mode<synchronous>, transform_indices = @transform_9, window_bounds = array<i64: 1, 32>}, {pipeline_mode = #tpu.pipeline_mode<synchronous>, transform_indices = @transform_10, window_bounds = array<i64: 32, 128>}, {pipeline_mode = #tpu.pipeline_mode<synchronous>, transform_indices = @transform_11, window_bounds = array<i64: 1, 128>}, {pipeline_mode = #tpu.pipeline_mode<synchronous>, transform_indices = @transform_12, window_bounds = array<i64: 128, 32>}, {pipeline_mode = #tpu.pipeline_mode<synchronous>, transform_indices = @transform_13, window_bounds = array<i64: 1, 32>}, {pipeline_mode = #tpu.pipeline_mode<synchronous>, transform_indices = @transform_14, window_bounds = array<i64: 1, 32>}, {pipeline_mode = #tpu.pipeline_mode<synchronous>, transform_indices = @transform_15, window_bounds = array<i64: 1, 32>}, {pipeline_mode = #tpu.pipeline_mode<synchronous>, transform_indices = @transform_16, window_bounds = array<i64: 1, 32>}, {pipeline_mode = #tpu.pipeline_mode<synchronous>, transform_indices = @transform_17, window_bounds = array<i64: 1, 32>}, {pipeline_mode = #tpu.pipeline_mode<synchronous>, transform_indices = @transform_18, window_bounds = array<i64: 32, 96>}, {pipeline_mode = #tpu.pipeline_mode<synchronous>, transform_indices = @transform_19, window_bounds = array<i64: 1, 96>}, {pipeline_mode = #tpu.pipeline_mode<synchronous>, transform_indices = @transform_20, window_bounds = array<i64: 32, 32>}, {pipeline_mode = #tpu.pipeline_mode<synchronous>, transform_indices = @transform_21, window_bounds = array<i64: 1, 32>}, {pipeline_mode = #tpu.pipeline_mode<synchronous>, transform_indices = @transform_22, window_bounds = array<i64: 32, 128>}, {pipeline_mode = #tpu.pipeline_mode<synchronous>, transform_indices = @transform_23, window_bounds = array<i64: 1, 128>}, {pipeline_mode = #tpu.pipeline_mode<synchronous>, transform_indices = @transform_24, window_bounds = array<i64: 128, 32>}, {pipeline_mode = #tpu.pipeline_mode<synchronous>, transform_indices = @transform_25, window_bounds = array<i64: 1, 32>}, {pipeline_mode = #tpu.pipeline_mode<synchronous>, transform_indices = @transform_26, window_bounds = array<i64: 1, 32>}, {pipeline_mode = #tpu.pipeline_mode<synchronous>, transform_indices = @transform_27, window_bounds = array<i64: 1, 32>}, {pipeline_mode = #tpu.pipeline_mode<synchronous>, transform_indices = @transform_28, window_bounds = array<i64: 1, 32>}, {pipeline_mode = #tpu.pipeline_mode<synchronous>, transform_indices = @transform_29, window_bounds = array<i64: 1, 32>}, {pipeline_mode = #tpu.pipeline_mode<synchronous>, transform_indices = @transform_30, window_bounds = array<i64: 32, 128>}, {pipeline_mode = #tpu.pipeline_mode<synchronous>, transform_indices = @transform_31, window_bounds = array<i64: 1, 128>}, {transform_indices = @transform_32, window_bounds = array<i64: 1, 8, 128>}]} {
    %c0 = arith.constant 0 : index
    %c0_0 = arith.constant 0 : index
    %c0_1 = arith.constant 0 : index
    %0 = vector.load %arg1[%c0, %c0_0, %c0_1] : memref<1x8x32xf32, #tpu.memory_space<vmem>>, vector<1x8x32xf32>
    %1 = vector.shape_cast %0 : vector<1x8x32xf32> to vector<8x32xf32>
    %c0_2 = arith.constant 0 : index
    %c0_3 = arith.constant 0 : index
    %2 = vector.load %arg5[%c0_2, %c0_3] : memref<32x32xf32, #tpu.memory_space<vmem>>, vector<32x32xf32>
    %cst = arith.constant dense<0.000000e+00> : vector<8x32xf32>
    %3 = tpu.matmul %1, %2, %cst {dimension_numbers = #tpu.dot_dimension_numbers<[1], [0], [0], [1], [0, 0, 1, 1], [], []>} : vector<8x32xf32>, vector<32x32xf32>, vector<8x32xf32> -> vector<8x32xf32>
    %c0_4 = arith.constant 0 : index
    %c0_5 = arith.constant 0 : index
    %4 = vector.load %arg6[%c0_4, %c0_5] : memref<1x32xf32, #tpu.memory_space<vmem>>, vector<1x32xf32>
    %5 = vector.broadcast %4 : vector<1x32xf32> to vector<8x32xf32>
    %6 = arith.addf %3, %5 : vector<8x32xf32>
    %c0_6 = arith.constant 0 : index
    %c0_7 = arith.constant 0 : index
    %c0_8 = arith.constant 0 : index
    %7 = vector.load %arg2[%c0_6, %c0_7, %c0_8] : memref<1x8x1xi32, #tpu.memory_space<vmem>>, vector<1x8x1xi32>
    %8 = vector.shape_cast %7 : vector<1x8x1xi32> to vector<8x1xi32>
    %9 = tpu.iota {dimensions = array<i32: 1>} : vector<8x600xi32>
    %10 = vector.broadcast %8 : vector<8x1xi32> to vector<8x600xi32>
    %11 = arith.cmpi eq, %9, %10 : vector<8x600xi32>
    %cst_9 = arith.constant 1.000000e+00 : f32
    %cst_10 = arith.constant 0.000000e+00 : f32
    %12 = vector.broadcast %cst_9 : f32 to vector<8x600xf32>
    %13 = vector.broadcast %cst_10 : f32 to vector<8x600xf32>
    %14 = arith.select %11, %12, %13 : vector<8x600xi1>, vector<8x600xf32>
    %c0_11 = arith.constant 0 : index
    %c0_12 = arith.constant 0 : index
    %15 = vector.load %arg4[%c0_11, %c0_12] : memref<600x32xf32, #tpu.memory_space<vmem>>, vector<600x32xf32>
    %cst_13 = arith.constant dense<0.000000e+00> : vector<8x32xf32>
    %16 = tpu.matmul %14, %15, %cst_13 {dimension_numbers = #tpu.dot_dimension_numbers<[1], [0], [0], [1], [0, 0, 1, 1], [], []>} : vector<8x600xf32>, vector<600x32xf32>, vector<8x32xf32> -> vector<8x32xf32>
    %17 = arith.addf %6, %16 : vector<8x32xf32>
    %c0_14 = arith.constant 0 : index
    %c0_15 = arith.constant 0 : index
    %c0_16 = arith.constant 0 : index
    %18 = vector.load %arg3[%c0_14, %c0_15, %c0_16] : memref<1x1x8xf32, #tpu.memory_space<vmem>>, vector<1x1x8xf32>
    %19 = vector.shape_cast %18 : vector<1x1x8xf32> to vector<1x8xf32>
    %c0_17 = arith.constant 0 : index
    %c0_18 = arith.constant 0 : index
    %20 = vector.load %arg7[%c0_17, %c0_18] : memref<32x96xf32, #tpu.memory_space<vmem>>, vector<32x96xf32>
    %c0_19 = arith.constant 0 : index
    %c0_20 = arith.constant 0 : index
    %21 = vector.load %arg8[%c0_19, %c0_20] : memref<1x96xf32, #tpu.memory_space<vmem>>, vector<1x96xf32>
    %c0_21 = arith.constant 0 : index
    %c0_22 = arith.constant 0 : index
    %22 = vector.load %arg9[%c0_21, %c0_22] : memref<32x32xf32, #tpu.memory_space<vmem>>, vector<32x32xf32>
    %c0_23 = arith.constant 0 : index
    %c0_24 = arith.constant 0 : index
    %23 = vector.load %arg10[%c0_23, %c0_24] : memref<1x32xf32, #tpu.memory_space<vmem>>, vector<1x32xf32>
    %c0_25 = arith.constant 0 : index
    %c0_26 = arith.constant 0 : index
    %24 = vector.load %arg11[%c0_25, %c0_26] : memref<32x128xf32, #tpu.memory_space<vmem>>, vector<32x128xf32>
    %c0_27 = arith.constant 0 : index
    %c0_28 = arith.constant 0 : index
    %25 = vector.load %arg12[%c0_27, %c0_28] : memref<1x128xf32, #tpu.memory_space<vmem>>, vector<1x128xf32>
    %c0_29 = arith.constant 0 : index
    %c0_30 = arith.constant 0 : index
    %26 = vector.load %arg13[%c0_29, %c0_30] : memref<128x32xf32, #tpu.memory_space<vmem>>, vector<128x32xf32>
    %c0_31 = arith.constant 0 : index
    %c0_32 = arith.constant 0 : index
    %27 = vector.load %arg14[%c0_31, %c0_32] : memref<1x32xf32, #tpu.memory_space<vmem>>, vector<1x32xf32>
    %c0_33 = arith.constant 0 : index
    %c0_34 = arith.constant 0 : index
    %28 = vector.load %arg15[%c0_33, %c0_34] : memref<1x32xf32, #tpu.memory_space<vmem>>, vector<1x32xf32>
    %c0_35 = arith.constant 0 : index
    %c0_36 = arith.constant 0 : index
    %29 = vector.load %arg16[%c0_35, %c0_36] : memref<1x32xf32, #tpu.memory_space<vmem>>, vector<1x32xf32>
    %c0_37 = arith.constant 0 : index
    %c0_38 = arith.constant 0 : index
    %30 = vector.load %arg17[%c0_37, %c0_38] : memref<1x32xf32, #tpu.memory_space<vmem>>, vector<1x32xf32>
    %c0_39 = arith.constant 0 : index
    %c0_40 = arith.constant 0 : index
    %31 = vector.load %arg18[%c0_39, %c0_40] : memref<1x32xf32, #tpu.memory_space<vmem>>, vector<1x32xf32>
    %cst_41 = arith.constant dense<0.000000e+00> : vector<8x96xf32>
    %32 = tpu.matmul %17, %20, %cst_41 {dimension_numbers = #tpu.dot_dimension_numbers<[1], [0], [0], [1], [0, 0, 1, 1], [], []>} : vector<8x32xf32>, vector<32x96xf32>, vector<8x96xf32> -> vector<8x96xf32>
    %33 = vector.broadcast %21 : vector<1x96xf32> to vector<8x96xf32>
    %34 = arith.addf %32, %33 : vector<8x96xf32>
    %35 = vector.extract_strided_slice %34 {offsets = [0, 0], sizes = [8, 8], strides = [1, 1]} : vector<8x96xf32> to vector<8x8xf32>
    %36 = vector.extract_strided_slice %34 {offsets = [0, 32], sizes = [8, 8], strides = [1, 1]} : vector<8x96xf32> to vector<8x8xf32>
    %37 = vector.extract_strided_slice %34 {offsets = [0, 64], sizes = [8, 8], strides = [1, 1]} : vector<8x96xf32> to vector<8x8xf32>
    %38 = tpu.transpose %36, [1, 0] : vector<8x8xf32> -> vector<8x8xf32>
    %cst_42 = arith.constant dense<0.000000e+00> : vector<8x8xf32>
    %39 = tpu.matmul %35, %38, %cst_42 {dimension_numbers = #tpu.dot_dimension_numbers<[1], [0], [0], [1], [0, 0, 1, 1], [], []>} : vector<8x8xf32>, vector<8x8xf32>, vector<8x8xf32> -> vector<8x8xf32>
    %cst_43 = arith.constant 0.353553385 : f32
    %40 = vector.broadcast %cst_43 : f32 to vector<8x8xf32>
    %41 = arith.mulf %39, %40 : vector<8x8xf32>
    %42 = vector.broadcast %19 : vector<1x8xf32> to vector<8x8xf32>
    %43 = arith.addf %41, %42 : vector<8x8xf32>
    %cst_44 = arith.constant dense<0xFF800000> : vector<8xf32>
    %44 = vector.multi_reduction <maximumf>, %43, %cst_44 [1] : vector<8x8xf32> to vector<8xf32>
    %45 = vector.shape_cast %44 : vector<8xf32> to vector<8x1xf32>
    %46 = vector.broadcast %45 : vector<8x1xf32> to vector<8x8xf32>
    %47 = arith.subf %43, %46 : vector<8x8xf32>
    %48 = math.exp %47 : vector<8x8xf32>
    %cst_45 = arith.constant dense<0.000000e+00> : vector<8xf32>
    %49 = vector.multi_reduction <add>, %48, %cst_45 [1] : vector<8x8xf32> to vector<8xf32>
    %50 = vector.shape_cast %49 : vector<8xf32> to vector<8x1xf32>
    %51 = tpu.reciprocal %50 {approx = true} : vector<8x1xf32> -> vector<8x1xf32>
    %52 = vector.broadcast %51 : vector<8x1xf32> to vector<8x8xf32>
    %53 = arith.mulf %48, %52 : vector<8x8xf32>
    %cst_46 = arith.constant dense<0.000000e+00> : vector<8x8xf32>
    %54 = tpu.matmul %53, %37, %cst_46 {dimension_numbers = #tpu.dot_dimension_numbers<[1], [0], [0], [1], [0, 0, 1, 1], [], []>} : vector<8x8xf32>, vector<8x8xf32>, vector<8x8xf32> -> vector<8x8xf32>
    %55 = vector.extract_strided_slice %34 {offsets = [0, 8], sizes = [8, 8], strides = [1, 1]} : vector<8x96xf32> to vector<8x8xf32>
    %56 = vector.extract_strided_slice %34 {offsets = [0, 40], sizes = [8, 8], strides = [1, 1]} : vector<8x96xf32> to vector<8x8xf32>
    %57 = vector.extract_strided_slice %34 {offsets = [0, 72], sizes = [8, 8], strides = [1, 1]} : vector<8x96xf32> to vector<8x8xf32>
    %58 = tpu.transpose %56, [1, 0] : vector<8x8xf32> -> vector<8x8xf32>
    %cst_47 = arith.constant dense<0.000000e+00> : vector<8x8xf32>
    %59 = tpu.matmul %55, %58, %cst_47 {dimension_numbers = #tpu.dot_dimension_numbers<[1], [0], [0], [1], [0, 0, 1, 1], [], []>} : vector<8x8xf32>, vector<8x8xf32>, vector<8x8xf32> -> vector<8x8xf32>
    %cst_48 = arith.constant 0.353553385 : f32
    %60 = vector.broadcast %cst_48 : f32 to vector<8x8xf32>
    %61 = arith.mulf %59, %60 : vector<8x8xf32>
    %62 = vector.broadcast %19 : vector<1x8xf32> to vector<8x8xf32>
    %63 = arith.addf %61, %62 : vector<8x8xf32>
    %cst_49 = arith.constant dense<0xFF800000> : vector<8xf32>
    %64 = vector.multi_reduction <maximumf>, %63, %cst_49 [1] : vector<8x8xf32> to vector<8xf32>
    %65 = vector.shape_cast %64 : vector<8xf32> to vector<8x1xf32>
    %66 = vector.broadcast %65 : vector<8x1xf32> to vector<8x8xf32>
    %67 = arith.subf %63, %66 : vector<8x8xf32>
    %68 = math.exp %67 : vector<8x8xf32>
    %cst_50 = arith.constant dense<0.000000e+00> : vector<8xf32>
    %69 = vector.multi_reduction <add>, %68, %cst_50 [1] : vector<8x8xf32> to vector<8xf32>
    %70 = vector.shape_cast %69 : vector<8xf32> to vector<8x1xf32>
    %71 = tpu.reciprocal %70 {approx = true} : vector<8x1xf32> -> vector<8x1xf32>
    %72 = vector.broadcast %71 : vector<8x1xf32> to vector<8x8xf32>
    %73 = arith.mulf %68, %72 : vector<8x8xf32>
    %cst_51 = arith.constant dense<0.000000e+00> : vector<8x8xf32>
    %74 = tpu.matmul %73, %57, %cst_51 {dimension_numbers = #tpu.dot_dimension_numbers<[1], [0], [0], [1], [0, 0, 1, 1], [], []>} : vector<8x8xf32>, vector<8x8xf32>, vector<8x8xf32> -> vector<8x8xf32>
    %75 = vector.extract_strided_slice %34 {offsets = [0, 16], sizes = [8, 8], strides = [1, 1]} : vector<8x96xf32> to vector<8x8xf32>
    %76 = vector.extract_strided_slice %34 {offsets = [0, 48], sizes = [8, 8], strides = [1, 1]} : vector<8x96xf32> to vector<8x8xf32>
    %77 = vector.extract_strided_slice %34 {offsets = [0, 80], sizes = [8, 8], strides = [1, 1]} : vector<8x96xf32> to vector<8x8xf32>
    %78 = tpu.transpose %76, [1, 0] : vector<8x8xf32> -> vector<8x8xf32>
    %cst_52 = arith.constant dense<0.000000e+00> : vector<8x8xf32>
    %79 = tpu.matmul %75, %78, %cst_52 {dimension_numbers = #tpu.dot_dimension_numbers<[1], [0], [0], [1], [0, 0, 1, 1], [], []>} : vector<8x8xf32>, vector<8x8xf32>, vector<8x8xf32> -> vector<8x8xf32>
    %cst_53 = arith.constant 0.353553385 : f32
    %80 = vector.broadcast %cst_53 : f32 to vector<8x8xf32>
    %81 = arith.mulf %79, %80 : vector<8x8xf32>
    %82 = vector.broadcast %19 : vector<1x8xf32> to vector<8x8xf32>
    %83 = arith.addf %81, %82 : vector<8x8xf32>
    %cst_54 = arith.constant dense<0xFF800000> : vector<8xf32>
    %84 = vector.multi_reduction <maximumf>, %83, %cst_54 [1] : vector<8x8xf32> to vector<8xf32>
    %85 = vector.shape_cast %84 : vector<8xf32> to vector<8x1xf32>
    %86 = vector.broadcast %85 : vector<8x1xf32> to vector<8x8xf32>
    %87 = arith.subf %83, %86 : vector<8x8xf32>
    %88 = math.exp %87 : vector<8x8xf32>
    %cst_55 = arith.constant dense<0.000000e+00> : vector<8xf32>
    %89 = vector.multi_reduction <add>, %88, %cst_55 [1] : vector<8x8xf32> to vector<8xf32>
    %90 = vector.shape_cast %89 : vector<8xf32> to vector<8x1xf32>
    %91 = tpu.reciprocal %90 {approx = true} : vector<8x1xf32> -> vector<8x1xf32>
    %92 = vector.broadcast %91 : vector<8x1xf32> to vector<8x8xf32>
    %93 = arith.mulf %88, %92 : vector<8x8xf32>
    %cst_56 = arith.constant dense<0.000000e+00> : vector<8x8xf32>
    %94 = tpu.matmul %93, %77, %cst_56 {dimension_numbers = #tpu.dot_dimension_numbers<[1], [0], [0], [1], [0, 0, 1, 1], [], []>} : vector<8x8xf32>, vector<8x8xf32>, vector<8x8xf32> -> vector<8x8xf32>
    %95 = vector.extract_strided_slice %34 {offsets = [0, 24], sizes = [8, 8], strides = [1, 1]} : vector<8x96xf32> to vector<8x8xf32>
    %96 = vector.extract_strided_slice %34 {offsets = [0, 56], sizes = [8, 8], strides = [1, 1]} : vector<8x96xf32> to vector<8x8xf32>
    %97 = vector.extract_strided_slice %34 {offsets = [0, 88], sizes = [8, 8], strides = [1, 1]} : vector<8x96xf32> to vector<8x8xf32>
    %98 = tpu.transpose %96, [1, 0] : vector<8x8xf32> -> vector<8x8xf32>
    %cst_57 = arith.constant dense<0.000000e+00> : vector<8x8xf32>
    %99 = tpu.matmul %95, %98, %cst_57 {dimension_numbers = #tpu.dot_dimension_numbers<[1], [0], [0], [1], [0, 0, 1, 1], [], []>} : vector<8x8xf32>, vector<8x8xf32>, vector<8x8xf32> -> vector<8x8xf32>
    %cst_58 = arith.constant 0.353553385 : f32
    %100 = vector.broadcast %cst_58 : f32 to vector<8x8xf32>
    %101 = arith.mulf %99, %100 : vector<8x8xf32>
    %102 = vector.broadcast %19 : vector<1x8xf32> to vector<8x8xf32>
    %103 = arith.addf %101, %102 : vector<8x8xf32>
    %cst_59 = arith.constant dense<0xFF800000> : vector<8xf32>
    %104 = vector.multi_reduction <maximumf>, %103, %cst_59 [1] : vector<8x8xf32> to vector<8xf32>
    %105 = vector.shape_cast %104 : vector<8xf32> to vector<8x1xf32>
    %106 = vector.broadcast %105 : vector<8x1xf32> to vector<8x8xf32>
    %107 = arith.subf %103, %106 : vector<8x8xf32>
    %108 = math.exp %107 : vector<8x8xf32>
    %cst_60 = arith.constant dense<0.000000e+00> : vector<8xf32>
    %109 = vector.multi_reduction <add>, %108, %cst_60 [1] : vector<8x8xf32> to vector<8xf32>
    %110 = vector.shape_cast %109 : vector<8xf32> to vector<8x1xf32>
    %111 = tpu.reciprocal %110 {approx = true} : vector<8x1xf32> -> vector<8x1xf32>
    %112 = vector.broadcast %111 : vector<8x1xf32> to vector<8x8xf32>
    %113 = arith.mulf %108, %112 : vector<8x8xf32>
    %cst_61 = arith.constant dense<0.000000e+00> : vector<8x8xf32>
    %114 = tpu.matmul %113, %97, %cst_61 {dimension_numbers = #tpu.dot_dimension_numbers<[1], [0], [0], [1], [0, 0, 1, 1], [], []>} : vector<8x8xf32>, vector<8x8xf32>, vector<8x8xf32> -> vector<8x8xf32>
    %115 = tpu.concatenate %54, %74, %94, %114 in 1 : vector<8x8xf32>, vector<8x8xf32>, vector<8x8xf32>, vector<8x8xf32> -> vector<8x32xf32>
    %cst_62 = arith.constant dense<0.000000e+00> : vector<8x32xf32>
    %116 = tpu.matmul %115, %22, %cst_62 {dimension_numbers = #tpu.dot_dimension_numbers<[1], [0], [0], [1], [0, 0, 1, 1], [], []>} : vector<8x32xf32>, vector<32x32xf32>, vector<8x32xf32> -> vector<8x32xf32>
    %117 = vector.broadcast %23 : vector<1x32xf32> to vector<8x32xf32>
    %118 = arith.addf %116, %117 : vector<8x32xf32>
    %119 = arith.addf %17, %118 : vector<8x32xf32>
    %cst_63 = arith.constant dense<0.000000e+00> : vector<8xf32>
    %120 = vector.multi_reduction <add>, %119, %cst_63 [1] : vector<8x32xf32> to vector<8xf32>
    %121 = vector.shape_cast %120 : vector<8xf32> to vector<8x1xf32>
    %cst_64 = arith.constant 3.200000e+01 : f32
    %122 = vector.broadcast %cst_64 : f32 to vector<8x1xf32>
    %123 = arith.divf %121, %122 : vector<8x1xf32>
    %124 = vector.broadcast %123 : vector<8x1xf32> to vector<8x32xf32>
    %125 = arith.subf %119, %124 : vector<8x32xf32>
    %126 = arith.mulf %125, %125 : vector<8x32xf32>
    %cst_65 = arith.constant dense<0.000000e+00> : vector<8xf32>
    %127 = vector.multi_reduction <add>, %126, %cst_65 [1] : vector<8x32xf32> to vector<8xf32>
    %128 = vector.shape_cast %127 : vector<8xf32> to vector<8x1xf32>
    %cst_66 = arith.constant 3.200000e+01 : f32
    %129 = vector.broadcast %cst_66 : f32 to vector<8x1xf32>
    %130 = arith.divf %128, %129 : vector<8x1xf32>
    %cst_67 = arith.constant 9.99999974E-6 : f32
    %131 = vector.broadcast %cst_67 : f32 to vector<8x1xf32>
    %132 = arith.addf %130, %131 : vector<8x1xf32>
    %133 = math.rsqrt %132 : vector<8x1xf32>
    %134 = vector.broadcast %133 : vector<8x1xf32> to vector<8x32xf32>
    %135 = arith.mulf %125, %134 : vector<8x32xf32>
    %136 = vector.broadcast %28 : vector<1x32xf32> to vector<8x32xf32>
    %137 = arith.mulf %135, %136 : vector<8x32xf32>
    %138 = vector.broadcast %29 : vector<1x32xf32> to vector<8x32xf32>
    %139 = arith.addf %137, %138 : vector<8x32xf32>
    %cst_68 = arith.constant dense<0.000000e+00> : vector<8x128xf32>
    %140 = tpu.matmul %139, %24, %cst_68 {dimension_numbers = #tpu.dot_dimension_numbers<[1], [0], [0], [1], [0, 0, 1, 1], [], []>} : vector<8x32xf32>, vector<32x128xf32>, vector<8x128xf32> -> vector<8x128xf32>
    %141 = vector.broadcast %25 : vector<1x128xf32> to vector<8x128xf32>
    %142 = arith.addf %140, %141 : vector<8x128xf32>
    %cst_69 = arith.constant 0.000000e+00 : f32
    %143 = vector.broadcast %cst_69 : f32 to vector<8x128xf32>
    %144 = arith.maximumf %142, %143 : vector<8x128xf32>
    %cst_70 = arith.constant dense<0.000000e+00> : vector<8x32xf32>
    %145 = tpu.matmul %144, %26, %cst_70 {dimension_numbers = #tpu.dot_dimension_numbers<[1], [0], [0], [1], [0, 0, 1, 1], [], []>} : vector<8x128xf32>, vector<128x32xf32>, vector<8x32xf32> -> vector<8x32xf32>
    %146 = vector.broadcast %27 : vector<1x32xf32> to vector<8x32xf32>
    %147 = arith.addf %145, %146 : vector<8x32xf32>
    %148 = arith.addf %139, %147 : vector<8x32xf32>
    %cst_71 = arith.constant dense<0.000000e+00> : vector<8xf32>
    %149 = vector.multi_reduction <add>, %148, %cst_71 [1] : vector<8x32xf32> to vector<8xf32>
    %150 = vector.shape_cast %149 : vector<8xf32> to vector<8x1xf32>
    %cst_72 = arith.constant 3.200000e+01 : f32
    %151 = vector.broadcast %cst_72 : f32 to vector<8x1xf32>
    %152 = arith.divf %150, %151 : vector<8x1xf32>
    %153 = vector.broadcast %152 : vector<8x1xf32> to vector<8x32xf32>
    %154 = arith.subf %148, %153 : vector<8x32xf32>
    %155 = arith.mulf %154, %154 : vector<8x32xf32>
    %cst_73 = arith.constant dense<0.000000e+00> : vector<8xf32>
    %156 = vector.multi_reduction <add>, %155, %cst_73 [1] : vector<8x32xf32> to vector<8xf32>
    %157 = vector.shape_cast %156 : vector<8xf32> to vector<8x1xf32>
    %cst_74 = arith.constant 3.200000e+01 : f32
    %158 = vector.broadcast %cst_74 : f32 to vector<8x1xf32>
    %159 = arith.divf %157, %158 : vector<8x1xf32>
    %cst_75 = arith.constant 9.99999974E-6 : f32
    %160 = vector.broadcast %cst_75 : f32 to vector<8x1xf32>
    %161 = arith.addf %159, %160 : vector<8x1xf32>
    %162 = math.rsqrt %161 : vector<8x1xf32>
    %163 = vector.broadcast %162 : vector<8x1xf32> to vector<8x32xf32>
    %164 = arith.mulf %154, %163 : vector<8x32xf32>
    %165 = vector.broadcast %30 : vector<1x32xf32> to vector<8x32xf32>
    %166 = arith.mulf %164, %165 : vector<8x32xf32>
    %167 = vector.broadcast %31 : vector<1x32xf32> to vector<8x32xf32>
    %168 = arith.addf %166, %167 : vector<8x32xf32>
    %c0_76 = arith.constant 0 : index
    %c0_77 = arith.constant 0 : index
    %169 = vector.load %arg19[%c0_76, %c0_77] : memref<32x96xf32, #tpu.memory_space<vmem>>, vector<32x96xf32>
    %c0_78 = arith.constant 0 : index
    %c0_79 = arith.constant 0 : index
    %170 = vector.load %arg20[%c0_78, %c0_79] : memref<1x96xf32, #tpu.memory_space<vmem>>, vector<1x96xf32>
    %c0_80 = arith.constant 0 : index
    %c0_81 = arith.constant 0 : index
    %171 = vector.load %arg21[%c0_80, %c0_81] : memref<32x32xf32, #tpu.memory_space<vmem>>, vector<32x32xf32>
    %c0_82 = arith.constant 0 : index
    %c0_83 = arith.constant 0 : index
    %172 = vector.load %arg22[%c0_82, %c0_83] : memref<1x32xf32, #tpu.memory_space<vmem>>, vector<1x32xf32>
    %c0_84 = arith.constant 0 : index
    %c0_85 = arith.constant 0 : index
    %173 = vector.load %arg23[%c0_84, %c0_85] : memref<32x128xf32, #tpu.memory_space<vmem>>, vector<32x128xf32>
    %c0_86 = arith.constant 0 : index
    %c0_87 = arith.constant 0 : index
    %174 = vector.load %arg24[%c0_86, %c0_87] : memref<1x128xf32, #tpu.memory_space<vmem>>, vector<1x128xf32>
    %c0_88 = arith.constant 0 : index
    %c0_89 = arith.constant 0 : index
    %175 = vector.load %arg25[%c0_88, %c0_89] : memref<128x32xf32, #tpu.memory_space<vmem>>, vector<128x32xf32>
    %c0_90 = arith.constant 0 : index
    %c0_91 = arith.constant 0 : index
    %176 = vector.load %arg26[%c0_90, %c0_91] : memref<1x32xf32, #tpu.memory_space<vmem>>, vector<1x32xf32>
    %c0_92 = arith.constant 0 : index
    %c0_93 = arith.constant 0 : index
    %177 = vector.load %arg27[%c0_92, %c0_93] : memref<1x32xf32, #tpu.memory_space<vmem>>, vector<1x32xf32>
    %c0_94 = arith.constant 0 : index
    %c0_95 = arith.constant 0 : index
    %178 = vector.load %arg28[%c0_94, %c0_95] : memref<1x32xf32, #tpu.memory_space<vmem>>, vector<1x32xf32>
    %c0_96 = arith.constant 0 : index
    %c0_97 = arith.constant 0 : index
    %179 = vector.load %arg29[%c0_96, %c0_97] : memref<1x32xf32, #tpu.memory_space<vmem>>, vector<1x32xf32>
    %c0_98 = arith.constant 0 : index
    %c0_99 = arith.constant 0 : index
    %180 = vector.load %arg30[%c0_98, %c0_99] : memref<1x32xf32, #tpu.memory_space<vmem>>, vector<1x32xf32>
    %cst_100 = arith.constant dense<0.000000e+00> : vector<8x96xf32>
    %181 = tpu.matmul %168, %169, %cst_100 {dimension_numbers = #tpu.dot_dimension_numbers<[1], [0], [0], [1], [0, 0, 1, 1], [], []>} : vector<8x32xf32>, vector<32x96xf32>, vector<8x96xf32> -> vector<8x96xf32>
    %182 = vector.broadcast %170 : vector<1x96xf32> to vector<8x96xf32>
    %183 = arith.addf %181, %182 : vector<8x96xf32>
    %184 = vector.extract_strided_slice %183 {offsets = [0, 0], sizes = [8, 8], strides = [1, 1]} : vector<8x96xf32> to vector<8x8xf32>
    %185 = vector.extract_strided_slice %183 {offsets = [0, 32], sizes = [8, 8], strides = [1, 1]} : vector<8x96xf32> to vector<8x8xf32>
    %186 = vector.extract_strided_slice %183 {offsets = [0, 64], sizes = [8, 8], strides = [1, 1]} : vector<8x96xf32> to vector<8x8xf32>
    %187 = tpu.transpose %185, [1, 0] : vector<8x8xf32> -> vector<8x8xf32>
    %cst_101 = arith.constant dense<0.000000e+00> : vector<8x8xf32>
    %188 = tpu.matmul %184, %187, %cst_101 {dimension_numbers = #tpu.dot_dimension_numbers<[1], [0], [0], [1], [0, 0, 1, 1], [], []>} : vector<8x8xf32>, vector<8x8xf32>, vector<8x8xf32> -> vector<8x8xf32>
    %cst_102 = arith.constant 0.353553385 : f32
    %189 = vector.broadcast %cst_102 : f32 to vector<8x8xf32>
    %190 = arith.mulf %188, %189 : vector<8x8xf32>
    %191 = vector.broadcast %19 : vector<1x8xf32> to vector<8x8xf32>
    %192 = arith.addf %190, %191 : vector<8x8xf32>
    %cst_103 = arith.constant dense<0xFF800000> : vector<8xf32>
    %193 = vector.multi_reduction <maximumf>, %192, %cst_103 [1] : vector<8x8xf32> to vector<8xf32>
    %194 = vector.shape_cast %193 : vector<8xf32> to vector<8x1xf32>
    %195 = vector.broadcast %194 : vector<8x1xf32> to vector<8x8xf32>
    %196 = arith.subf %192, %195 : vector<8x8xf32>
    %197 = math.exp %196 : vector<8x8xf32>
    %cst_104 = arith.constant dense<0.000000e+00> : vector<8xf32>
    %198 = vector.multi_reduction <add>, %197, %cst_104 [1] : vector<8x8xf32> to vector<8xf32>
    %199 = vector.shape_cast %198 : vector<8xf32> to vector<8x1xf32>
    %200 = tpu.reciprocal %199 {approx = true} : vector<8x1xf32> -> vector<8x1xf32>
    %201 = vector.broadcast %200 : vector<8x1xf32> to vector<8x8xf32>
    %202 = arith.mulf %197, %201 : vector<8x8xf32>
    %cst_105 = arith.constant dense<0.000000e+00> : vector<8x8xf32>
    %203 = tpu.matmul %202, %186, %cst_105 {dimension_numbers = #tpu.dot_dimension_numbers<[1], [0], [0], [1], [0, 0, 1, 1], [], []>} : vector<8x8xf32>, vector<8x8xf32>, vector<8x8xf32> -> vector<8x8xf32>
    %204 = vector.extract_strided_slice %183 {offsets = [0, 8], sizes = [8, 8], strides = [1, 1]} : vector<8x96xf32> to vector<8x8xf32>
    %205 = vector.extract_strided_slice %183 {offsets = [0, 40], sizes = [8, 8], strides = [1, 1]} : vector<8x96xf32> to vector<8x8xf32>
    %206 = vector.extract_strided_slice %183 {offsets = [0, 72], sizes = [8, 8], strides = [1, 1]} : vector<8x96xf32> to vector<8x8xf32>
    %207 = tpu.transpose %205, [1, 0] : vector<8x8xf32> -> vector<8x8xf32>
    %cst_106 = arith.constant dense<0.000000e+00> : vector<8x8xf32>
    %208 = tpu.matmul %204, %207, %cst_106 {dimension_numbers = #tpu.dot_dimension_numbers<[1], [0], [0], [1], [0, 0, 1, 1], [], []>} : vector<8x8xf32>, vector<8x8xf32>, vector<8x8xf32> -> vector<8x8xf32>
    %cst_107 = arith.constant 0.353553385 : f32
    %209 = vector.broadcast %cst_107 : f32 to vector<8x8xf32>
    %210 = arith.mulf %208, %209 : vector<8x8xf32>
    %211 = vector.broadcast %19 : vector<1x8xf32> to vector<8x8xf32>
    %212 = arith.addf %210, %211 : vector<8x8xf32>
    %cst_108 = arith.constant dense<0xFF800000> : vector<8xf32>
    %213 = vector.multi_reduction <maximumf>, %212, %cst_108 [1] : vector<8x8xf32> to vector<8xf32>
    %214 = vector.shape_cast %213 : vector<8xf32> to vector<8x1xf32>
    %215 = vector.broadcast %214 : vector<8x1xf32> to vector<8x8xf32>
    %216 = arith.subf %212, %215 : vector<8x8xf32>
    %217 = math.exp %216 : vector<8x8xf32>
    %cst_109 = arith.constant dense<0.000000e+00> : vector<8xf32>
    %218 = vector.multi_reduction <add>, %217, %cst_109 [1] : vector<8x8xf32> to vector<8xf32>
    %219 = vector.shape_cast %218 : vector<8xf32> to vector<8x1xf32>
    %220 = tpu.reciprocal %219 {approx = true} : vector<8x1xf32> -> vector<8x1xf32>
    %221 = vector.broadcast %220 : vector<8x1xf32> to vector<8x8xf32>
    %222 = arith.mulf %217, %221 : vector<8x8xf32>
    %cst_110 = arith.constant dense<0.000000e+00> : vector<8x8xf32>
    %223 = tpu.matmul %222, %206, %cst_110 {dimension_numbers = #tpu.dot_dimension_numbers<[1], [0], [0], [1], [0, 0, 1, 1], [], []>} : vector<8x8xf32>, vector<8x8xf32>, vector<8x8xf32> -> vector<8x8xf32>
    %224 = vector.extract_strided_slice %183 {offsets = [0, 16], sizes = [8, 8], strides = [1, 1]} : vector<8x96xf32> to vector<8x8xf32>
    %225 = vector.extract_strided_slice %183 {offsets = [0, 48], sizes = [8, 8], strides = [1, 1]} : vector<8x96xf32> to vector<8x8xf32>
    %226 = vector.extract_strided_slice %183 {offsets = [0, 80], sizes = [8, 8], strides = [1, 1]} : vector<8x96xf32> to vector<8x8xf32>
    %227 = tpu.transpose %225, [1, 0] : vector<8x8xf32> -> vector<8x8xf32>
    %cst_111 = arith.constant dense<0.000000e+00> : vector<8x8xf32>
    %228 = tpu.matmul %224, %227, %cst_111 {dimension_numbers = #tpu.dot_dimension_numbers<[1], [0], [0], [1], [0, 0, 1, 1], [], []>} : vector<8x8xf32>, vector<8x8xf32>, vector<8x8xf32> -> vector<8x8xf32>
    %cst_112 = arith.constant 0.353553385 : f32
    %229 = vector.broadcast %cst_112 : f32 to vector<8x8xf32>
    %230 = arith.mulf %228, %229 : vector<8x8xf32>
    %231 = vector.broadcast %19 : vector<1x8xf32> to vector<8x8xf32>
    %232 = arith.addf %230, %231 : vector<8x8xf32>
    %cst_113 = arith.constant dense<0xFF800000> : vector<8xf32>
    %233 = vector.multi_reduction <maximumf>, %232, %cst_113 [1] : vector<8x8xf32> to vector<8xf32>
    %234 = vector.shape_cast %233 : vector<8xf32> to vector<8x1xf32>
    %235 = vector.broadcast %234 : vector<8x1xf32> to vector<8x8xf32>
    %236 = arith.subf %232, %235 : vector<8x8xf32>
    %237 = math.exp %236 : vector<8x8xf32>
    %cst_114 = arith.constant dense<0.000000e+00> : vector<8xf32>
    %238 = vector.multi_reduction <add>, %237, %cst_114 [1] : vector<8x8xf32> to vector<8xf32>
    %239 = vector.shape_cast %238 : vector<8xf32> to vector<8x1xf32>
    %240 = tpu.reciprocal %239 {approx = true} : vector<8x1xf32> -> vector<8x1xf32>
    %241 = vector.broadcast %240 : vector<8x1xf32> to vector<8x8xf32>
    %242 = arith.mulf %237, %241 : vector<8x8xf32>
    %cst_115 = arith.constant dense<0.000000e+00> : vector<8x8xf32>
    %243 = tpu.matmul %242, %226, %cst_115 {dimension_numbers = #tpu.dot_dimension_numbers<[1], [0], [0], [1], [0, 0, 1, 1], [], []>} : vector<8x8xf32>, vector<8x8xf32>, vector<8x8xf32> -> vector<8x8xf32>
    %244 = vector.extract_strided_slice %183 {offsets = [0, 24], sizes = [8, 8], strides = [1, 1]} : vector<8x96xf32> to vector<8x8xf32>
    %245 = vector.extract_strided_slice %183 {offsets = [0, 56], sizes = [8, 8], strides = [1, 1]} : vector<8x96xf32> to vector<8x8xf32>
    %246 = vector.extract_strided_slice %183 {offsets = [0, 88], sizes = [8, 8], strides = [1, 1]} : vector<8x96xf32> to vector<8x8xf32>
    %247 = tpu.transpose %245, [1, 0] : vector<8x8xf32> -> vector<8x8xf32>
    %cst_116 = arith.constant dense<0.000000e+00> : vector<8x8xf32>
    %248 = tpu.matmul %244, %247, %cst_116 {dimension_numbers = #tpu.dot_dimension_numbers<[1], [0], [0], [1], [0, 0, 1, 1], [], []>} : vector<8x8xf32>, vector<8x8xf32>, vector<8x8xf32> -> vector<8x8xf32>
    %cst_117 = arith.constant 0.353553385 : f32
    %249 = vector.broadcast %cst_117 : f32 to vector<8x8xf32>
    %250 = arith.mulf %248, %249 : vector<8x8xf32>
    %251 = vector.broadcast %19 : vector<1x8xf32> to vector<8x8xf32>
    %252 = arith.addf %250, %251 : vector<8x8xf32>
    %cst_118 = arith.constant dense<0xFF800000> : vector<8xf32>
    %253 = vector.multi_reduction <maximumf>, %252, %cst_118 [1] : vector<8x8xf32> to vector<8xf32>
    %254 = vector.shape_cast %253 : vector<8xf32> to vector<8x1xf32>
    %255 = vector.broadcast %254 : vector<8x1xf32> to vector<8x8xf32>
    %256 = arith.subf %252, %255 : vector<8x8xf32>
    %257 = math.exp %256 : vector<8x8xf32>
    %cst_119 = arith.constant dense<0.000000e+00> : vector<8xf32>
    %258 = vector.multi_reduction <add>, %257, %cst_119 [1] : vector<8x8xf32> to vector<8xf32>
    %259 = vector.shape_cast %258 : vector<8xf32> to vector<8x1xf32>
    %260 = tpu.reciprocal %259 {approx = true} : vector<8x1xf32> -> vector<8x1xf32>
    %261 = vector.broadcast %260 : vector<8x1xf32> to vector<8x8xf32>
    %262 = arith.mulf %257, %261 : vector<8x8xf32>
    %cst_120 = arith.constant dense<0.000000e+00> : vector<8x8xf32>
    %263 = tpu.matmul %262, %246, %cst_120 {dimension_numbers = #tpu.dot_dimension_numbers<[1], [0], [0], [1], [0, 0, 1, 1], [], []>} : vector<8x8xf32>, vector<8x8xf32>, vector<8x8xf32> -> vector<8x8xf32>
    %264 = tpu.concatenate %203, %223, %243, %263 in 1 : vector<8x8xf32>, vector<8x8xf32>, vector<8x8xf32>, vector<8x8xf32> -> vector<8x32xf32>
    %cst_121 = arith.constant dense<0.000000e+00> : vector<8x32xf32>
    %265 = tpu.matmul %264, %171, %cst_121 {dimension_numbers = #tpu.dot_dimension_numbers<[1], [0], [0], [1], [0, 0, 1, 1], [], []>} : vector<8x32xf32>, vector<32x32xf32>, vector<8x32xf32> -> vector<8x32xf32>
    %266 = vector.broadcast %172 : vector<1x32xf32> to vector<8x32xf32>
    %267 = arith.addf %265, %266 : vector<8x32xf32>
    %268 = arith.addf %168, %267 : vector<8x32xf32>
    %cst_122 = arith.constant dense<0.000000e+00> : vector<8xf32>
    %269 = vector.multi_reduction <add>, %268, %cst_122 [1] : vector<8x32xf32> to vector<8xf32>
    %270 = vector.shape_cast %269 : vector<8xf32> to vector<8x1xf32>
    %cst_123 = arith.constant 3.200000e+01 : f32
    %271 = vector.broadcast %cst_123 : f32 to vector<8x1xf32>
    %272 = arith.divf %270, %271 : vector<8x1xf32>
    %273 = vector.broadcast %272 : vector<8x1xf32> to vector<8x32xf32>
    %274 = arith.subf %268, %273 : vector<8x32xf32>
    %275 = arith.mulf %274, %274 : vector<8x32xf32>
    %cst_124 = arith.constant dense<0.000000e+00> : vector<8xf32>
    %276 = vector.multi_reduction <add>, %275, %cst_124 [1] : vector<8x32xf32> to vector<8xf32>
    %277 = vector.shape_cast %276 : vector<8xf32> to vector<8x1xf32>
    %cst_125 = arith.constant 3.200000e+01 : f32
    %278 = vector.broadcast %cst_125 : f32 to vector<8x1xf32>
    %279 = arith.divf %277, %278 : vector<8x1xf32>
    %cst_126 = arith.constant 9.99999974E-6 : f32
    %280 = vector.broadcast %cst_126 : f32 to vector<8x1xf32>
    %281 = arith.addf %279, %280 : vector<8x1xf32>
    %282 = math.rsqrt %281 : vector<8x1xf32>
    %283 = vector.broadcast %282 : vector<8x1xf32> to vector<8x32xf32>
    %284 = arith.mulf %274, %283 : vector<8x32xf32>
    %285 = vector.broadcast %177 : vector<1x32xf32> to vector<8x32xf32>
    %286 = arith.mulf %284, %285 : vector<8x32xf32>
    %287 = vector.broadcast %178 : vector<1x32xf32> to vector<8x32xf32>
    %288 = arith.addf %286, %287 : vector<8x32xf32>
    %cst_127 = arith.constant dense<0.000000e+00> : vector<8x128xf32>
    %289 = tpu.matmul %288, %173, %cst_127 {dimension_numbers = #tpu.dot_dimension_numbers<[1], [0], [0], [1], [0, 0, 1, 1], [], []>} : vector<8x32xf32>, vector<32x128xf32>, vector<8x128xf32> -> vector<8x128xf32>
    %290 = vector.broadcast %174 : vector<1x128xf32> to vector<8x128xf32>
    %291 = arith.addf %289, %290 : vector<8x128xf32>
    %cst_128 = arith.constant 0.000000e+00 : f32
    %292 = vector.broadcast %cst_128 : f32 to vector<8x128xf32>
    %293 = arith.maximumf %291, %292 : vector<8x128xf32>
    %cst_129 = arith.constant dense<0.000000e+00> : vector<8x32xf32>
    %294 = tpu.matmul %293, %175, %cst_129 {dimension_numbers = #tpu.dot_dimension_numbers<[1], [0], [0], [1], [0, 0, 1, 1], [], []>} : vector<8x128xf32>, vector<128x32xf32>, vector<8x32xf32> -> vector<8x32xf32>
    %295 = vector.broadcast %176 : vector<1x32xf32> to vector<8x32xf32>
    %296 = arith.addf %294, %295 : vector<8x32xf32>
    %297 = arith.addf %288, %296 : vector<8x32xf32>
    %cst_130 = arith.constant dense<0.000000e+00> : vector<8xf32>
    %298 = vector.multi_reduction <add>, %297, %cst_130 [1] : vector<8x32xf32> to vector<8xf32>
    %299 = vector.shape_cast %298 : vector<8xf32> to vector<8x1xf32>
    %cst_131 = arith.constant 3.200000e+01 : f32
    %300 = vector.broadcast %cst_131 : f32 to vector<8x1xf32>
    %301 = arith.divf %299, %300 : vector<8x1xf32>
    %302 = vector.broadcast %301 : vector<8x1xf32> to vector<8x32xf32>
    %303 = arith.subf %297, %302 : vector<8x32xf32>
    %304 = arith.mulf %303, %303 : vector<8x32xf32>
    %cst_132 = arith.constant dense<0.000000e+00> : vector<8xf32>
    %305 = vector.multi_reduction <add>, %304, %cst_132 [1] : vector<8x32xf32> to vector<8xf32>
    %306 = vector.shape_cast %305 : vector<8xf32> to vector<8x1xf32>
    %cst_133 = arith.constant 3.200000e+01 : f32
    %307 = vector.broadcast %cst_133 : f32 to vector<8x1xf32>
    %308 = arith.divf %306, %307 : vector<8x1xf32>
    %cst_134 = arith.constant 9.99999974E-6 : f32
    %309 = vector.broadcast %cst_134 : f32 to vector<8x1xf32>
    %310 = arith.addf %308, %309 : vector<8x1xf32>
    %311 = math.rsqrt %310 : vector<8x1xf32>
    %312 = vector.broadcast %311 : vector<8x1xf32> to vector<8x32xf32>
    %313 = arith.mulf %303, %312 : vector<8x32xf32>
    %314 = vector.broadcast %179 : vector<1x32xf32> to vector<8x32xf32>
    %315 = arith.mulf %313, %314 : vector<8x32xf32>
    %316 = vector.broadcast %180 : vector<1x32xf32> to vector<8x32xf32>
    %317 = arith.addf %315, %316 : vector<8x32xf32>
    %c0_135 = arith.constant 0 : index
    %c0_136 = arith.constant 0 : index
    %318 = vector.load %arg31[%c0_135, %c0_136] : memref<32x128xf32, #tpu.memory_space<vmem>>, vector<32x128xf32>
    %cst_137 = arith.constant dense<0.000000e+00> : vector<8x128xf32>
    %319 = tpu.matmul %317, %318, %cst_137 {dimension_numbers = #tpu.dot_dimension_numbers<[1], [0], [0], [1], [0, 0, 1, 1], [], []>} : vector<8x32xf32>, vector<32x128xf32>, vector<8x128xf32> -> vector<8x128xf32>
    %c0_138 = arith.constant 0 : index
    %c0_139 = arith.constant 0 : index
    %320 = vector.load %arg32[%c0_138, %c0_139] : memref<1x128xf32, #tpu.memory_space<vmem>>, vector<1x128xf32>
    %321 = vector.broadcast %320 : vector<1x128xf32> to vector<8x128xf32>
    %322 = arith.addf %319, %321 : vector<8x128xf32>
    %323 = tpu.iota {dimensions = array<i32: 0>} : vector<8x128xi32>
    %324 = tpu.iota {dimensions = array<i32: 1>} : vector<8x128xi32>
    %c0_i32 = arith.constant 0 : i32
    %325 = vector.broadcast %c0_i32 : i32 to vector<8x128xi32>
    %326 = arith.cmpi eq, %323, %325 : vector<8x128xi32>
    %cst_140 = arith.constant 0.000000e+00 : f32
    %327 = vector.broadcast %cst_140 : f32 to vector<8x128xf32>
    %328 = arith.select %326, %327, %322 : vector<8x128xi1>, vector<8x128xf32>
    %c7_i32 = arith.constant 7 : i32
    %329 = vector.broadcast %c7_i32 : i32 to vector<8x128xi32>
    %330 = arith.cmpi eq, %323, %329 : vector<8x128xi32>
    %c0_i32_141 = arith.constant 0 : i32
    %331 = vector.broadcast %c0_i32_141 : i32 to vector<8x128xi32>
    %332 = arith.cmpi eq, %324, %331 : vector<8x128xi32>
    %cst_142 = arith.constant 6.000000e+02 : f32
    %cst_143 = arith.constant 0.000000e+00 : f32
    %333 = vector.broadcast %cst_142 : f32 to vector<8x128xf32>
    %334 = vector.broadcast %cst_143 : f32 to vector<8x128xf32>
    %335 = arith.select %332, %333, %334 : vector<8x128xi1>, vector<8x128xf32>
    %336 = arith.select %330, %335, %328 : vector<8x128xi1>, vector<8x128xf32>
    %c0_144 = arith.constant 0 : index
    %c0_145 = arith.constant 0 : index
    %c0_146 = arith.constant 0 : index
    %337 = vector.load %arg33[%c0_144, %c0_145, %c0_146] : memref<1x8x128xf32, #tpu.memory_space<vmem>>, vector<1x8x128xf32>
    %338 = vector.shape_cast %337 : vector<1x8x128xf32> to vector<8x128xf32>
    %339 = vector.shape_cast %336 : vector<8x128xf32> to vector<1x8x128xf32>
    tpu.vector_store %arg33[%c0_144, %c0_145, %c0_146], %339 {strides = array<i32>} : memref<1x8x128xf32, #tpu.memory_space<vmem>>, vector<1x8x128xf32>,
    return
  }
  func.func @transform_0(%arg0: i32) -> (i32, i32, i32) {
    %c0_i32 = arith.constant 0 : i32
    %c0_i32_0 = arith.constant 0 : i32
    %c0_i32_1 = arith.constant 0 : i32
    return %arg0, %c0_i32, %c0_i32_0 : i32, i32, i32
  }
  func.func @transform_1(%arg0: i32) -> (i32, i32, i32) {
    %c0_i32 = arith.constant 0 : i32
    %c0_i32_0 = arith.constant 0 : i32
    %c0_i32_1 = arith.constant 0 : i32
    return %arg0, %c0_i32, %c0_i32_0 : i32, i32, i32
  }
  func.func @transform_2(%arg0: i32) -> (i32, i32, i32) {
    %c0_i32 = arith.constant 0 : i32
    %c0_i32_0 = arith.constant 0 : i32
    %c0_i32_1 = arith.constant 0 : i32
    return %arg0, %c0_i32, %c0_i32_0 : i32, i32, i32
  }
  func.func @transform_3(%arg0: i32) -> (i32, i32) {
    %c0_i32 = arith.constant 0 : i32
    %c0_i32_0 = arith.constant 0 : i32
    %c0_i32_1 = arith.constant 0 : i32
    return %c0_i32, %c0_i32_0 : i32, i32
  }
  func.func @transform_4(%arg0: i32) -> (i32, i32) {
    %c0_i32 = arith.constant 0 : i32
    %c0_i32_0 = arith.constant 0 : i32
    %c0_i32_1 = arith.constant 0 : i32
    return %c0_i32, %c0_i32_0 : i32, i32
  }
  func.func @transform_5(%arg0: i32) -> (i32, i32) {
    %c0_i32 = arith.constant 0 : i32
    %c0_i32_0 = arith.constant 0 : i32
    %c0_i32_1 = arith.constant 0 : i32
    return %c0_i32, %c0_i32_0 : i32, i32
  }
  func.func @transform_6(%arg0: i32) -> (i32, i32) {
    %c0_i32 = arith.constant 0 : i32
    %c0_i32_0 = arith.constant 0 : i32
    %c0_i32_1 = arith.constant 0 : i32
    return %c0_i32, %c0_i32_0 : i32, i32
  }
  func.func @transform_7(%arg0: i32) -> (i32, i32) {
    %c0_i32 = arith.constant 0 : i32
    %c0_i32_0 = arith.constant 0 : i32
    %c0_i32_1 = arith.constant 0 : i32
    return %c0_i32, %c0_i32_0 : i32, i32
  }
  func.func @transform_8(%arg0: i32) -> (i32, i32) {
    %c0_i32 = arith.constant 0 : i32
    %c0_i32_0 = arith.constant 0 : i32
    %c0_i32_1 = arith.constant 0 : i32
    return %c0_i32, %c0_i32_0 : i32, i32
  }
  func.func @transform_9(%arg0: i32) -> (i32, i32) {
    %c0_i32 = arith.constant 0 : i32
    %c0_i32_0 = arith.constant 0 : i32
    %c0_i32_1 = arith.constant 0 : i32
    return %c0_i32, %c0_i32_0 : i32, i32
  }
  func.func @transform_10(%arg0: i32) -> (i32, i32) {
    %c0_i32 = arith.constant 0 : i32
    %c0_i32_0 = arith.constant 0 : i32
    %c0_i32_1 = arith.constant 0 : i32
    return %c0_i32, %c0_i32_0 : i32, i32
  }
  func.func @transform_11(%arg0: i32) -> (i32, i32) {
    %c0_i32 = arith.constant 0 : i32
    %c0_i32_0 = arith.constant 0 : i32
    %c0_i32_1 = arith.constant 0 : i32
    return %c0_i32, %c0_i32_0 : i32, i32
  }
  func.func @transform_12(%arg0: i32) -> (i32, i32) {
    %c0_i32 = arith.constant 0 : i32
    %c0_i32_0 = arith.constant 0 : i32
    %c0_i32_1 = arith.constant 0 : i32
    return %c0_i32, %c0_i32_0 : i32, i32
  }
  func.func @transform_13(%arg0: i32) -> (i32, i32) {
    %c0_i32 = arith.constant 0 : i32
    %c0_i32_0 = arith.constant 0 : i32
    %c0_i32_1 = arith.constant 0 : i32
    return %c0_i32, %c0_i32_0 : i32, i32
  }
  func.func @transform_14(%arg0: i32) -> (i32, i32) {
    %c0_i32 = arith.constant 0 : i32
    %c0_i32_0 = arith.constant 0 : i32
    %c0_i32_1 = arith.constant 0 : i32
    return %c0_i32, %c0_i32_0 : i32, i32
  }
  func.func @transform_15(%arg0: i32) -> (i32, i32) {
    %c0_i32 = arith.constant 0 : i32
    %c0_i32_0 = arith.constant 0 : i32
    %c0_i32_1 = arith.constant 0 : i32
    return %c0_i32, %c0_i32_0 : i32, i32
  }
  func.func @transform_16(%arg0: i32) -> (i32, i32) {
    %c0_i32 = arith.constant 0 : i32
    %c0_i32_0 = arith.constant 0 : i32
    %c0_i32_1 = arith.constant 0 : i32
    return %c0_i32, %c0_i32_0 : i32, i32
  }
  func.func @transform_17(%arg0: i32) -> (i32, i32) {
    %c0_i32 = arith.constant 0 : i32
    %c0_i32_0 = arith.constant 0 : i32
    %c0_i32_1 = arith.constant 0 : i32
    return %c0_i32, %c0_i32_0 : i32, i32
  }
  func.func @transform_18(%arg0: i32) -> (i32, i32) {
    %c0_i32 = arith.constant 0 : i32
    %c0_i32_0 = arith.constant 0 : i32
    %c0_i32_1 = arith.constant 0 : i32
    return %c0_i32, %c0_i32_0 : i32, i32
  }
  func.func @transform_19(%arg0: i32) -> (i32, i32) {
    %c0_i32 = arith.constant 0 : i32
    %c0_i32_0 = arith.constant 0 : i32
    %c0_i32_1 = arith.constant 0 : i32
    return %c0_i32, %c0_i32_0 : i32, i32
  }
  func.func @transform_20(%arg0: i32) -> (i32, i32) {
    %c0_i32 = arith.constant 0 : i32
    %c0_i32_0 = arith.constant 0 : i32
    %c0_i32_1 = arith.constant 0 : i32
    return %c0_i32, %c0_i32_0 : i32, i32
  }
  func.func @transform_21(%arg0: i32) -> (i32, i32) {
    %c0_i32 = arith.constant 0 : i32
    %c0_i32_0 = arith.constant 0 : i32
    %c0_i32_1 = arith.constant 0 : i32
    return %c0_i32, %c0_i32_0 : i32, i32
  }
  func.func @transform_22(%arg0: i32) -> (i32, i32) {
    %c0_i32 = arith.constant 0 : i32
    %c0_i32_0 = arith.constant 0 : i32
    %c0_i32_1 = arith.constant 0 : i32
    return %c0_i32, %c0_i32_0 : i32, i32
  }
  func.func @transform_23(%arg0: i32) -> (i32, i32) {
    %c0_i32 = arith.constant 0 : i32
    %c0_i32_0 = arith.constant 0 : i32
    %c0_i32_1 = arith.constant 0 : i32
    return %c0_i32, %c0_i32_0 : i32, i32
  }
  func.func @transform_24(%arg0: i32) -> (i32, i32) {
    %c0_i32 = arith.constant 0 : i32
    %c0_i32_0 = arith.constant 0 : i32
    %c0_i32_1 = arith.constant 0 : i32
    return %c0_i32, %c0_i32_0 : i32, i32
  }
  func.func @transform_25(%arg0: i32) -> (i32, i32) {
    %c0_i32 = arith.constant 0 : i32
    %c0_i32_0 = arith.constant 0 : i32
    %c0_i32_1 = arith.constant 0 : i32
    return %c0_i32, %c0_i32_0 : i32, i32
  }
  func.func @transform_26(%arg0: i32) -> (i32, i32) {
    %c0_i32 = arith.constant 0 : i32
    %c0_i32_0 = arith.constant 0 : i32
    %c0_i32_1 = arith.constant 0 : i32
    return %c0_i32, %c0_i32_0 : i32, i32
  }
  func.func @transform_27(%arg0: i32) -> (i32, i32) {
    %c0_i32 = arith.constant 0 : i32
    %c0_i32_0 = arith.constant 0 : i32
    %c0_i32_1 = arith.constant 0 : i32
    return %c0_i32, %c0_i32_0 : i32, i32
  }
  func.func @transform_28(%arg0: i32) -> (i32, i32) {
    %c0_i32 = arith.constant 0 : i32
    %c0_i32_0 = arith.constant 0 : i32
    %c0_i32_1 = arith.constant 0 : i32
    return %c0_i32, %c0_i32_0 : i32, i32
  }
  func.func @transform_29(%arg0: i32) -> (i32, i32) {
    %c0_i32 = arith.constant 0 : i32
    %c0_i32_0 = arith.constant 0 : i32
    %c0_i32_1 = arith.constant 0 : i32
    return %c0_i32, %c0_i32_0 : i32, i32
  }
  func.func @transform_30(%arg0: i32) -> (i32, i32) {
    %c0_i32 = arith.constant 0 : i32
    %c0_i32_0 = arith.constant 0 : i32
    %c0_i32_1 = arith.constant 0 : i32
    return %c0_i32, %c0_i32_0 : i32, i32
  }
  func.func @transform_31(%arg0: i32) -> (i32, i32) {
    %c0_i32 = arith.constant 0 : i32
    %c0_i32_0 = arith.constant 0 : i32
    %c0_i32_1 = arith.constant 0 : i32
    return %c0_i32, %c0_i32_0 : i32, i32
  }
  func.func @transform_32(%arg0: i32) -> (i32, i32, i32) {
    %c0_i32 = arith.constant 0 : i32
    %c0_i32_0 = arith.constant 0 : i32
    %c0_i32_1 = arith.constant 0 : i32
    return %arg0, %c0_i32, %c0_i32_0 : i32, i32, i32
  }
}

</mosaic_0001>

<bundles_post_ra>
// kernel: tpu_custom_call.1
= control target key start
LH: loop header
LB: loop body
LE: loop exit
PB: predicated region body
PF: predicated region fallthrough
CT: control target
= control target key end

     0   :  { %s4525_s6 = smov 1   ;;  %s4526_s10 = smov 2   ;;  %s5293_s0 = inlined_call_operand.smem [shape: u32[33], index: -1, kind: input, shape index: {}] }
   0x1   :  { %s4584_s5 = sld [smem:[%s5293_s0]]   ;;  %s4527_s14 = smov 3  }
   0x2   :  { %s4589_s9 = sld [smem:[%s5293_s0 + %s4525_s6]]   ;;  %s4528_s18 = smov 4  }
   0x3   :  { %s4594_s13 = sld [smem:[%s5293_s0 + %s4526_s10]]   ;;  %s4529_s22 = smov 5  }
   0x4   :  { %s4599_s17 = sld [smem:[%s5293_s0 + %s4527_s14]]   ;;  %s4530_s26 = smov 6  }
   0x5   :  { %s4604_s21 = sld [smem:[%s5293_s0 + %s4528_s18]]   ;;  %s4531_s30 = smov 7  }
   0x6   :  { %s4609_s25 = sld [smem:[%s5293_s0 + %s4529_s22]]   ;;  %s4532_s4 = smov 8  }
   0x7   :  { %5313 = sst [smem:[#allocation5_spill]] %s4584_s5  ;;  %s4533_s10 = smov 9  }
   0x8   :  { %5314 = sst [smem:[#allocation6_spill]] %s4589_s9  ;;  %s4534_s15 = smov 10  }
   0x9   :  { %s4614_s29 = sld [smem:[%s5293_s0 + %s4530_s26]]   ;;  %s4535_s20 = smov 11  }
   0xa   :  { %s4619_s3 = sld [smem:[%s5293_s0 + %s4531_s30]]   ;;  %s4536_s26 = smov 12  }
   0xb   :  { %s4624_s8 = sld [smem:[%s5293_s0 + %s4532_s4]]   ;;  %s4537_s1 = smov 13  }
   0xc   :  { %s4629_s14 = sld [smem:[%s5293_s0 + %s4533_s10]]   ;;  %s4538_s7 = smov 14  }
   0xd   :  { %s4634_s19 = sld [smem:[%s5293_s0 + %s4534_s15]]   ;;  %s4539_s15 = smov 15  }
   0xe   :  { %s4639_s24 = sld [smem:[%s5293_s0 + %s4535_s20]]   ;;  %s4540_s22 = smov 16  }
   0xf   :  { %s4644_s30 = sld [smem:[%s5293_s0 + %s4536_s26]]   ;;  %s4541_s28 = smov 17  }
  0x10   :  { %5315 = sst [smem:[#allocation7_spill]] %s4619_s3 }
  0x11   :  { %5316 = sst [smem:[#allocation8_spill]] %s4624_s8 }
  0x12   :  { %s4649_s6 = sld [smem:[%s5293_s0 + %s4537_s1]]  }
  0x13   :  { %s4654_s12 = sld [smem:[%s5293_s0 + %s4538_s7]]   ;;  %s4542_s7 = smov 18  }
  0x14   :  { %5317 = sst [smem:[#allocation9_spill]] %s4639_s24 }
  0x15   :  { %s4659_s20 = sld [smem:[%s5293_s0 + %s4539_s15]]   ;;  %s4543_s15 = smov 19  }
  0x16   :  { %s4664_s27 = sld [smem:[%s5293_s0 + %s4540_s22]]   ;;  %s4544_s22 = smov 20  }
  0x17   :  { %s4669_s4 = sld [smem:[%s5293_s0 + %s4541_s28]]   ;;  %s4545_s28 = smov 21  }
  0x18   :  { %5318 = sst [smem:[#allocation10_spill]] %s4649_s6 }
  0x19   :  { %5319 = sst [smem:[#allocation11_spill]] %s4654_s12 }
  0x1a   :  { %s4674_s6 = sld [smem:[%s5293_s0 + %s4542_s7]]   ;;  %s4546_s7 = smov 22  }
  0x1b   :  { %s4679_s24 = sld [smem:[%s5293_s0 + %s4543_s15]]   ;;  %s4547_s15 = smov 23  }
  0x1c   :  { %5320 = sst [smem:[#allocation12_spill]] %s4664_s27 }
  0x1d   :  { %5321 = sst [smem:[#allocation13_spill]] %s4669_s4 }
  0x1e   :  { %s4684_s27 = sld [smem:[%s5293_s0 + %s4544_s22]]   ;;  %s4548_s22 = smov 24  }
  0x1f   :  { %s4689_s4 = sld [smem:[%s5293_s0 + %s4545_s28]]   ;;  %s4549_s28 = smov 25  }
  0x20   :  { %5322 = sst [smem:[#allocation14_spill]] %s4674_s6 }
  0x21   :  { %5323 = sst [smem:[#allocation15_spill]] %s4679_s24 }
  0x22   :  { %s4694_s6 = sld [smem:[%s5293_s0 + %s4546_s7]]   ;;  %s4550_s7 = smov 26  }
  0x23   :  { %s4699_s24 = sld [smem:[%s5293_s0 + %s4547_s15]]   ;;  %s4551_s15 = smov 27  }
  0x24   :  { %5324 = sst [smem:[#allocation16_spill]] %s4684_s27 }
  0x25   :  { %5325 = sst [smem:[#allocation17_spill]] %s4689_s4 }
  0x26   :  { %s4704_s27 = sld [smem:[%s5293_s0 + %s4548_s22]]   ;;  %s4552_s22 = smov 28  }
  0x27   :  { %s4709_s4 = sld [smem:[%s5293_s0 + %s4549_s28]]   ;;  %s4553_s28 = smov 29  }
  0x28   :  { %5326 = sst [smem:[#allocation18_spill]] %s4694_s6 }
  0x29   :  { %5327 = sst [smem:[#allocation19_spill]] %s4699_s24 }
  0x2a   :  { %s4714_s6 = sld [smem:[%s5293_s0 + %s4550_s7]]   ;;  %s4554_s7 = smov 30  }
  0x2b   :  { %s4719_s24 = sld [smem:[%s5293_s0 + %s4551_s15]]   ;;  %s4555_s15 = smov 31  }
  0x2c   :  { %5328 = sst [smem:[#allocation20_spill]] %s4704_s27 }
  0x2d   :  { %5329 = sst [smem:[#allocation21_spill]] %s4709_s4 }
  0x2e   :  { %s4724_s27 = sld [smem:[%s5293_s0 + %s4552_s22]]   ;;  %s4556_s22 = smov 32  }
  0x2f   :  { %s4729_s4 = sld [smem:[%s5293_s0 + %s4553_s28]]  }
  0x30   :  { %5330 = sst [smem:[#allocation22_spill]] %s4714_s6 }
  0x31   :  { %5331 = sst [smem:[#allocation23_spill]] %s4719_s24 }
  0x32   :  { %s4734_s6 = sld [smem:[%s5293_s0 + %s4554_s7]]  }
  0x33   :  { %s4739_s24 = sld [smem:[%s5293_s0 + %s4555_s15]]  }
  0x34   :  { %5332 = sst [smem:[#allocation24_spill]] %s4724_s27 }
  0x35   :  { %5333 = sst [smem:[#allocation25_spill]] %s4729_s4 }
  0x36   :  { %s4744_s27 = sld [smem:[%s5293_s0 + %s4556_s22]]  }
  0x38   :  { %5334 = sst [smem:[#allocation26_spill]] %s4734_s6 }
  0x39   :  { %70 = vsyncpa [#allocation3], 0 }
  0x3a   :  { %72 = vsyncpa [#allocation3 + $0x1], 0  ;;  %s4746_s28 = smov 0   ;;  %s4748_s1 = smov 0  }
  0x3b   :  { %s4750_s2 = smov 0   ;;  %s4752_s7 = smov 0  }
  0x3c LB: > { %s5335_s8 = sld [smem:[#allocation8_spill]]  ;;  %s4767_s0 = sadd.s32 4294967295, %s4523_s7   ;;  %s4515_s1 = sphi %s4748_s1, %s5371_s1   ;;  %s4511_s28 = sphi %s4746_s28, %s5370_s28   ;;  %s4523_s7 = sphi %s4752_s7, %s5373_s7   ;;  %s4519_s2 = sphi %s4750_s2, %s5372_s2  }
  0x3d   : > { %s5336_s6 = sld [smem:[#allocation26_spill]]  ;;  %s3815_s10 = sadd.s32 4294967294, %s4523_s7  }
  0x3e   : > { %s4771_s11 = sadd.s32 1, %s4523_s7   ;;  %s772_s15 = sadd.s32 1, %s4519_s2 }
  0x3f   : > { %s769_s16 = ssub.s32 %s4523_s7, %s4771_s11  ;;  %p782_p0 = scmp.ne.s32.totalorder %s4519_s2, %s4515_s1 }
  0x40   : > { %p770_p1 = scmp.eq.s32.totalorder %s769_s16, 0  ;;  %p783_p2 = scmp.eq.s32.totalorder %s4767_s0, 1 }
  0x41   : > { %p788_p3 = scmp.ne.s32.totalorder %s4515_s1, %s4511_s28  ;;  %p789_p4 = scmp.eq.s32.totalorder %s3815_s10, 1 }
  0x42   : > { %s4782_s18 = scalar_select %p770_p1, %s4519_s2, %s772_s15  }
  0x43   : > { %p4784_p5 = por %p783_p2, %p782_p0  ;;  %p4788_p6 = por %p789_p4, %p788_p3 }
  0x44   : > { %p3818_p7 = scmp.ge.s32.totalorder %s4523_s7, 1  ;;  %p914_p8 = scmp.lt.s32.totalorder %s4523_s7, 3 }
  0x46   : > { %p915_p9 = pnand %p3818_p7, %p914_p8 }
  0x47   : > { %p1002_p10 = scmp.lt.s32.totalorder (!%p915_p9), %s4767_s0, 1  ;;  %s5339_s9 = sld [smem:[#allocation6_spill]] (!%p915_p9) }
  0x48   : > { %918 = sbr.rel (%p915_p9) target bundleno = 6874 (0x1ada), region = 148  ;;  %s5340_s5 = sld [smem:[#allocation5_spill]] (!%p915_p9) }
  0x49   : > { %s5341_s3 = sld [smem:[#allocation7_spill]] (!%p915_p9) }
  0x4a   : > { %s5342_s12 = sld [smem:[#allocation11_spill]] (!%p915_p9) }
  0x4b   : > { %s5369_s4 = sld [smem:[#allocation25_spill]] (!%p915_p9) }
  0x4d   : > { %v1017_v0 = vld [vmem:[%s4604_s21 + $0x18] sm:$0xff]  ;;  %v4557_v1 = vmov 0   ;;  %v4558_v2 = vmov 0.0   ;;  %v1016_v3 = vld [vmem:[%s4604_s21 + $0x10] sm:$0xff]  ;;  %s4801_s26 = scalar_select %p1002_p10, %s4767_s0, 1  ;;  %v1015_v7 = vld [vmem:[%s4604_s21 + $0x8] sm:$0xff] }
  0x4e   : > { %4422 = vset.pattern.permute.xlu0 %v4557_v1  ;;  %4070 = vmatprep.subr.mxu0 %v4558_v2  ;;  %v1150_v4 = vld [vmem:[%s4599_s17 + $0xf8] sm:$0xff]  ;;  %v1149_v6 = vld [vmem:[%s4599_s17 + $0xf0] sm:$0xff]  ;;  %vm4559_vm0 = vmmov 0   ;;  %v1014_v9 = vld [vmem:[%s4604_s21] sm:$0xff]  ;;  %vm1025_vm1 = vcmask 261120   ;;  %vm1194_vm7 = vcmask 719872  }
  0x4f   : > { %v1134_v5 = vld [vmem:[%s4599_s17 + $0x78] sm:$0xff]  ;;  %4071 = vmatpush3.msra.mxu0 %v1017_v0  ;;  %3887 = vmatprep.subr.mxu1 %v1150_v4  ;;  %v1133_v8 = vld [vmem:[%s4599_s17 + $0x70] sm:$0xff]  ;;  %s3820_s10 = sshll.u32 %s4801_s26, 3  ;;  %v1148_v10 = vld [vmem:[%s4599_s17 + $0xe8] sm:$0xff]  ;;  %vm1528_vm8 = vcmask 64512   ;;  %vm2212_vm9 = vcmask 130048  }
  0x50   : > { %4072 = vmatprep.subr.mxu0 %v4558_v2  ;;  %4078 = vmatprep.mubr.msk.f32.mxu0 %vm4559_vm0, %v4558_v2  ;;  %s1009_s15 = scalar_lea.vmem %s5339_s9, %s3820_s10  ;;  %s1005_s16 = scalar_lea.vmem %s5340_s5, %s3820_s10  ;;  %v1182_v13 = vld [vmem:[%s4599_s17 + $0x1f8] sm:$0xff]  ;;  %v1132_v15 = vld [vmem:[%s4599_s17 + $0x68] sm:$0xff]  ;;  %v1181_v16 = vld [vmem:[%s4599_s17 + $0x1f0] sm:$0xff]  ;;  %vm2214_vm10 = vcmask 195584  }
  0x51   : > { %4073 = vmatpush3.msra.mxu0 %v1016_v3  ;;  %3888 = vmatpush3.msra.mxu1 %v1134_v5  ;;  %v1099_v11 = vld [vmem:[%s1009_s15] sm:$0xff]  ;;  %v1166_v14 = vld [vmem:[%s4599_s17 + $0x178] sm:$0xff]  ;;  %v1165_v18 = vld [vmem:[%s4599_s17 + $0x170] sm:$0xff]  ;;  %s4561_s10 = smov 96   ;;  %s5308_s15 = smov 64  }
  0x52   : > { %4074 = vmatprep.subr.mxu0 %v4558_v2  ;;  %3889 = vmatprep.subr.mxu1 %v1149_v6  ;;  %v1013_v12 = vld [vmem:[%s1005_s16] sm:$0xff]  ;;  %v1180_v20 = vld [vmem:[%s4599_s17 + $0x1e8] sm:$0xff]  ;;  %v1146_v21 = vld [vmem:[%s4599_s17 + $0xd8] sm:$0xff]  ;;  %s4563_s16 = smov 120   ;;  %s5298_s5 = smov 80  }
  0x53   : > { %4075 = vmatpush3.msra.mxu0 %v1015_v7  ;;  %3890 = vmatpush3.msra.mxu1 %v1133_v8  ;;  %v1147_v17 = vld [vmem:[%s4599_s17 + $0xe0] sm:$0xff]  ;;  %v1164_v22 = vld [vmem:[%s4599_s17 + $0x168] sm:$0xff]  ;;  %v1130_v23 = vld [vmem:[%s4599_s17 + $0x58] sm:$0xff]  ;;  %s5300_s9 = smov 72  }
  0x54   : > { %1107 = vperm.xlu0 %4422, %v1099_v11   ;;  %4076 = vmatprep.subr.mxu0 %v4558_v2  ;;  %v1131_v19 = vld [vmem:[%s4599_s17 + $0x60] sm:$0xff]  ;;  %v1145_v25 = vld [vmem:[%s4599_s17 + $0xd0] sm:$0xff]  ;;  %v1178_v28 = vld [vmem:[%s4599_s17 + $0x1d8] sm:$0xff] }
  0x55   : > { %4077 = vmatpush3.msra.mxu0 %v1014_v9  ;;  %3891 = vmatprep.subr.mxu1 %v1148_v10  ;;  %v1179_v24 = vld [vmem:[%s4599_s17 + $0x1e0] sm:$0xff]  ;;  %v1129_v27 = vld [vmem:[%s4599_s17 + $0x50] sm:$0xff]  ;;  %v1144_v29 = vld [vmem:[%s4599_s17 + $0xc8] sm:$0xff]  ;;  %v1100_v9 = vlaneseq }
  0x56   : > { %3922 = vmatprep.subr.mxu0 %v1182_v13  ;;  %4079 = vmatmul.mubr.msk.f32.vlgmr.msra.gmra.mxu0 %vm1025_vm1, %v1013_v12  ;;  %v1163_v26 = vld [vmem:[%s4599_s17 + $0x160] sm:$0xff]  ;;  %v1162_v30 = vld [vmem:[%s4599_s17 + $0x158] sm:$0xff]  ;;  %v1128_v31 = vld [vmem:[%s4599_s17 + $0x48] sm:$0xff] }
  0x57   : > { %3923 = vmatpush3.msra.mxu0 %v1166_v14  ;;  %3892 = vmatpush3.msra.mxu1 %v1132_v15  ;;  %v1177_v32 = vld [vmem:[%s4599_s17 + $0x1d0] sm:$0xff]  ;;  %v1143_v33 = vld [vmem:[%s4599_s17 + $0xc0] sm:$0xff]  ;;  %v1176_v36 = vld [vmem:[%s4599_s17 + $0x1c8] sm:$0xff]  ;;  %v4879_v10 = vand.u32 127, %v1100_v9 }
  0x58   : > { %3924 = vmatprep.subr.mxu0 %v1181_v16  ;;  %3893 = vmatprep.subr.mxu1 %v1147_v17  ;;  %v1161_v34 = vld [vmem:[%s4599_s17 + $0x150] sm:$0xff]  ;;  %v1127_v35 = vld [vmem:[%s4599_s17 + $0x40] sm:$0xff]  ;;  %v1142_v37 = vld [vmem:[%s4599_s17 + $0xb8] sm:$0xff]  ;;  %v4560_v16 = vmov 1.0  }
  0x59   : > { %3925 = vmatpush3.msra.mxu0 %v1165_v18  ;;  %3894 = vmatpush3.msra.mxu1 %v1131_v19  ;;  %v1160_v38 = vld [vmem:[%s4599_s17 + $0x148] sm:$0xff]  ;;  %v1126_v39 = vld [vmem:[%s4599_s17 + $0x38] sm:$0xff]  ;;  %v1175_v40 = vld [vmem:[%s4599_s17 + $0x1c0] sm:$0xff]  ;;  %v1102_v11 = vadd.s32 128, %v4879_v10  ;;  %v1104_v12 = vadd.s32 384, %v4879_v10  ;;  %v1103_v13 = vadd.s32 256, %v4879_v10 }
  0x5a   : > { %3926 = vmatprep.subr.mxu0 %v1180_v20  ;;  %3895 = vmatprep.subr.mxu1 %v1146_v21  ;;  %v1141_v41 = vld [vmem:[%s4599_s17 + $0xb0] sm:$0xff]  ;;  %v1159_v42 = vld [vmem:[%s4599_s17 + $0x140] sm:$0xff]  ;;  %v1174_v44 = vld [vmem:[%s4599_s17 + $0x1b8] sm:$0xff]  ;;  %vm3685_vm11 = vcmp.eq.s32.totalorder %v4879_v10, 0 }
  0x5b   : > { %3927 = vmatpush3.msra.mxu0 %v1164_v22  ;;  %3896 = vmatpush3.msra.mxu1 %v1130_v23  ;;  %v1125_v43 = vld [vmem:[%s4599_s17 + $0x30] sm:$0xff]  ;;  %v1140_v45 = vld [vmem:[%s4599_s17 + $0xa8] sm:$0xff]  ;;  %v1158_v46 = vld [vmem:[%s4599_s17 + $0x138] sm:$0xff] }
  0x5c   : > { %3928 = vmatprep.subr.mxu0 %v1179_v24  ;;  %3897 = vmatprep.subr.mxu1 %v1145_v25  ;;  %v1124_v47 = vld [vmem:[%s4599_s17 + $0x28] sm:$0xff]  ;;  %v1173_v48 = vld [vmem:[%s4599_s17 + $0x1b0] sm:$0xff]  ;;  %v1139_v49 = vld [vmem:[%s4599_s17 + $0xa0] sm:$0xff]  ;;  %v1105_v25 = vadd.s32 512, %v4879_v10 }
  0x5d   : > { %3929 = vmatpush3.msra.mxu0 %v1163_v26  ;;  %3898 = vmatpush3.msra.mxu1 %v1129_v27  ;;  %v1157_v50 = vld [vmem:[%s4599_s17 + $0x130] sm:$0xff]  ;;  %v1123_v51 = vld [vmem:[%s4599_s17 + $0x20] sm:$0xff]  ;;  %v1172_v52 = vld [vmem:[%s4599_s17 + $0x1a8] sm:$0xff] }
  0x5e   : > { %3930 = vmatprep.subr.mxu0 %v1178_v28  ;;  %3899 = vmatprep.subr.mxu1 %v1144_v29  ;;  %v1138_v53 = vld [vmem:[%s4599_s17 + $0x98] sm:$0xff]  ;;  %v1156_v54 = vld [vmem:[%s4599_s17 + $0x128] sm:$0xff]  ;;  %v1171_v56 = vld [vmem:[%s4599_s17 + $0x1a0] sm:$0xff] }
  0x5f   : > { %3931 = vmatpush3.msra.mxu0 %v1162_v30  ;;  %3900 = vmatpush3.msra.mxu1 %v1128_v31  ;;  %v1122_v55 = vld [vmem:[%s4599_s17 + $0x18] sm:$0xff]  ;;  %v1137_v57 = vld [vmem:[%s4599_s17 + $0x90] sm:$0xff]  ;;  %v1155_v58 = vld [vmem:[%s4599_s17 + $0x120] sm:$0xff] }
  0x60   : > { %3932 = vmatprep.subr.mxu0 %v1177_v32  ;;  %3901 = vmatprep.subr.mxu1 %v1143_v33  ;;  %v1121_v59 = vld [vmem:[%s4599_s17 + $0x10] sm:$0xff]  ;;  %v1170_v60 = vld [vmem:[%s4599_s17 + $0x198] sm:$0xff]  ;;  %v1136_v61 = vld [vmem:[%s4599_s17 + $0x88] sm:$0xff] }
  0x61   : > { %3933 = vmatpush3.msra.mxu0 %v1161_v34  ;;  %3902 = vmatpush3.msra.mxu1 %v1127_v35  ;;  %v1154_v62 = vld [vmem:[%s4599_s17 + $0x118] sm:$0xff]  ;;  %v1120_v63 = vld [vmem:[%s4599_s17 + $0x8] sm:$0xff]  ;;  %v1169_v0 = vld [vmem:[%s4599_s17 + $0x190] sm:$0xff] }
  0x62   : > { %3934 = vmatprep.subr.mxu0 %v1176_v36  ;;  %3903 = vmatprep.subr.mxu1 %v1142_v37  ;;  %v1135_v1 = vld [vmem:[%s4599_s17 + $0x80] sm:$0xff]  ;;  %v1153_v3 = vld [vmem:[%s4599_s17 + $0x110] sm:$0xff]  ;;  %v1168_v5 = vld [vmem:[%s4599_s17 + $0x188] sm:$0xff] }
  0x63   : > { %3935 = vmatpush3.msra.mxu0 %v1160_v38  ;;  %3904 = vmatpush3.msra.mxu1 %v1126_v39  ;;  %v1119_v4 = vld [vmem:[%s4599_s17] sm:$0xff]  ;;  %v1152_v6 = vld [vmem:[%s4599_s17 + $0x108] sm:$0xff]  ;;  %v1193_v15 = vld [vmem:[%s4599_s17 + $0x250] sm:$0xff] }
  0x64   : > { %3936 = vmatprep.subr.mxu0 %v1175_v40  ;;  %3905 = vmatprep.subr.mxu1 %v1141_v41  ;;  %v1167_v7 = vld [vmem:[%s4599_s17 + $0x180] sm:$0xff]  ;;  %v1192_v17 = vld [vmem:[%s4599_s17 + $0x248] sm:$0xff]  ;;  %v1190_v19 = vld [vmem:[%s4599_s17 + $0x238] sm:$0xff] }
  0x65   : > { %3937 = vmatpush3.msra.mxu0 %v1159_v42  ;;  %3906 = vmatpush3.msra.mxu1 %v1125_v43  ;;  %v1151_v8 = vld [vmem:[%s4599_s17 + $0x100] sm:$0xff]  ;;  %v1189_v20 = vld [vmem:[%s4599_s17 + $0x230] sm:$0xff]  ;;  %v1188_v21 = vld [vmem:[%s4599_s17 + $0x228] sm:$0xff] }
  0x66   : > { %3938 = vmatprep.subr.mxu0 %v1174_v44  ;;  %3907 = vmatprep.subr.mxu1 %v1140_v45  ;;  %v1191_v18 = vld [vmem:[%s4599_s17 + $0x240] sm:$0xff]  ;;  %v1186_v23 = vld [vmem:[%s4599_s17 + $0x218] sm:$0xff]  ;;  %v1185_v24 = vld [vmem:[%s4599_s17 + $0x210] sm:$0xff] }
  0x67   : > { %3939 = vmatpush3.msra.mxu0 %v1158_v46  ;;  %3908 = vmatpush3.msra.mxu1 %v1124_v47  ;;  %v1187_v22 = vld [vmem:[%s4599_s17 + $0x220] sm:$0xff]  ;;  %v1184_v26 = vld [vmem:[%s4599_s17 + $0x208] sm:$0xff]  ;;  %v1413_v29 = vld [vmem:[%s4614_s29 + $0x18] sm:$0xff] }
  0x68   : > { %3940 = vmatprep.subr.mxu0 %v1173_v48  ;;  %3909 = vmatprep.subr.mxu1 %v1139_v49  ;;  %v1183_v27 = vld [vmem:[%s4599_s17 + $0x200] sm:$0xff]  ;;  %v1412_v32 = vld [vmem:[%s4614_s29 + $0x10] sm:$0xff]  ;;  %v1411_v33 = vld [vmem:[%s4614_s29 + $0x8] sm:$0xff] }
  0x69   : > { %3941 = vmatpush3.msra.mxu0 %v1157_v50  ;;  %3910 = vmatpush3.msra.mxu1 %v1123_v51  ;;  %v1410_v34 = vld [vmem:[%s4614_s29] sm:$0xff] }
  0x6a   : > { %3942 = vmatprep.subr.mxu0 %v1172_v52  ;;  %3911 = vmatprep.subr.mxu1 %v1138_v53  ;;  %v3822_v41 = vld [vmem:[%s4609_s25] ss:$0 sm:$0xff] }
  0x6b   : > { %3943 = vmatpush3.msra.mxu0 %v1156_v54  ;;  %3912 = vmatpush3.msra.mxu1 %v1122_v55  ;;  %v3829_v48 = vld [vmem:[%s5341_s3] ss:$0 sm:$0xff]  ;;  %s5303_s3 = smov 112  }
  0x6c   : > { %3944 = vmatprep.subr.mxu0 %v1171_v56  ;;  %3913 = vmatprep.subr.mxu1 %v1137_v57 }
  0x6d   : > { %3945 = vmatpush3.msra.mxu0 %v1155_v58  ;;  %3914 = vmatpush3.msra.mxu1 %v1121_v59 }
  0x6e   : > { %3946 = vmatprep.subr.mxu0 %v1170_v60  ;;  %3915 = vmatprep.subr.mxu1 %v1136_v61 }
  0x6f   : > { %3947 = vmatpush3.msra.mxu0 %v1154_v62  ;;  %3916 = vmatpush3.msra.mxu1 %v1120_v63 }
  0x70   : > { %3948 = vmatprep.subr.mxu0 %v1169_v0  ;;  %3917 = vmatprep.subr.mxu1 %v1135_v1 }
  0x71   : > { %3949 = vmatpush3.msra.mxu0 %v1153_v3  ;;  %3918 = vmatpush3.msra.mxu1 %v1119_v4 }
  0x72   : > { %3950 = vmatprep.subr.mxu0 %v1168_v5  ;;  %4081 = vmatprep.subr.mxu1 %v4558_v2 }
  0x73   : > { %3951 = vmatpush3.msra.mxu0 %v1152_v6 }
  0x74   : > { %3952 = vmatprep.subr.mxu0 %v1167_v7 }
  0x75   : > { %3953 = vmatpush3.msra.mxu0 %v1151_v8 }
  0x76   : > { %4106 = vmatprep.subr.mxu0 %v4558_v2 }
  0xcf   : > { %v1108_v14 = vpop.permute.xlu0 %1107 }
  0xd0   : > { %vm1110_vm2 = vcmp.eq.s32.totalorder %v1102_v11, %v1108_v14  ;;  %vm1112_vm3 = vcmp.eq.s32.totalorder %v1104_v12, %v1108_v14  ;;  %vm1109_vm4 = vcmp.eq.s32.totalorder %v4879_v10, %v1108_v14  ;;  %vm1111_vm5 = vcmp.eq.s32.totalorder %v1103_v13, %v1108_v14 }
  0xd1   : > { %3824 = vmatprep.mubr.msk.f32.mxu1 %vm1110_vm2, %v4560_v16  ;;  %3826 = vmatprep.mubr.msk.f32.mxu0 %vm1112_vm3, %v4560_v16  ;;  %vm1113_vm6 = vcmp.eq.s32.totalorder %v1105_v25, %v1108_v14 }
  0xd2   : > { %3825 = vmatmul.mubr.msk.f32.vlgmr.msra.gmra.mxu1 %vm1109_vm4, %v4560_v16  ;;  %3827 = vmatmul.mubr.msk.f32.vlgmr.msra.gmra.mxu0 %vm1111_vm5, %v4560_v16  ;;  %v1118_v28 = vsel %vm1113_vm6, 1.0, %v4558_v2 }
  0xd3   : > { %4082 = vmatpush3.msra.mxu1 %v1193_v15  ;;  %4103 = vmatprep.mubr.msk.f32.mxu1 %vm4559_vm0, %v4558_v2 }
  0xd4   : > { %4083 = vmatprep.subr.mxu1 %v4558_v2  ;;  %4114 = vmatprep.mubr.msk.f32.mxu0 %vm4559_vm0, %v4558_v2 }
  0xd5   : > { %4084 = vmatpush3.msra.mxu1 %v1192_v17  ;;  %4107 = vmatpush3.msra.mxu0 %v1413_v29 }
  0xd6   : > { %4085 = vmatprep.subr.mxu1 %v4558_v2  ;;  %4108 = vmatprep.subr.mxu0 %v4558_v2 }
  0xd7   : > { %4086 = vmatpush3.msra.mxu1 %v1191_v18  ;;  %4109 = vmatpush3.msra.mxu0 %v1412_v32 }
  0xd8   : > { %4087 = vmatprep.subr.mxu1 %v4558_v2  ;;  %4110 = vmatprep.subr.mxu0 %v4558_v2 }
  0xd9   : > { %4088 = vmatpush3.msra.mxu1 %v1190_v19  ;;  %4111 = vmatpush3.msra.mxu0 %v1411_v33 }
  0xda   : > { %4089 = vmatprep.subr.mxu1 %v4558_v2  ;;  %4112 = vmatprep.subr.mxu0 %v4558_v2 }
  0xdb   : > { %4090 = vmatpush3.msra.mxu1 %v1189_v20  ;;  %4113 = vmatpush3.msra.mxu0 %v1410_v34 }
  0xdc   : > { %4091 = vmatprep.subr.mxu1 %v4558_v2  ;;  %4117 = vmatprep.subr.mxu0 %v4558_v2 }
  0xdd   : > { %4092 = vmatpush3.msra.mxu1 %v1188_v21 }
  0xde   : > { %4093 = vmatprep.subr.mxu1 %v4558_v2 }
  0xdf   : > { %4094 = vmatpush3.msra.mxu1 %v1187_v22 }
  0xe0   : > { %4095 = vmatprep.subr.mxu1 %v4558_v2 }
  0xe1   : > { %4096 = vmatpush3.msra.mxu1 %v1186_v23 }
  0xe2   : > { %4097 = vmatprep.subr.mxu1 %v4558_v2 }
  0xe3   : > { %4098 = vmatpush3.msra.mxu1 %v1185_v24 }
  0xe4   : > { %4099 = vmatprep.subr.mxu1 %v4558_v2 }
  0xe5   : > { %4100 = vmatpush3.msra.mxu1 %v1184_v26 }
  0xe6   : > { %4101 = vmatprep.subr.mxu1 %v4558_v2 }
  0xe7   : > { %4102 = vmatpush3.msra.mxu1 %v1183_v27 }
  0xe8   : > { %4104 = vmatmul.mubr.msk.f32.vlgmr.msra.gmra.mxu1 %vm1194_vm7, %v1118_v28  ;;  %4137 = vmatprep.subr.mxu1 %v4558_v2 }
  0xe9   : > { %4139 = vmatprep.mubr.msk.f32.mxu1 %vm4559_vm0, %v4558_v2 }
 0x116   : > { %v1095_v30 = vpop.f32.mrf.mxu0 }
 0x117   : > { %v1096_v44 = vadd.f32 %v3822_v41, %v1095_v30 }
 0x118   : > { %v4080_v31 = vpop.f32.mrf.mxu0 }
 0x192   : > { %v3919_v35 = vpop.f32.mrf.mxu1  ;;  %v3954_v36 = vpop.f32.mrf.mxu0 }
 0x194   : > { %v3920_v37 = vpop.f32.mrf.mxu1  ;;  %v3955_v38 = vpop.f32.mrf.mxu0 }
 0x195   : > { %v3921_v39 = vadd.f32 %v3920_v37, %v3919_v35  ;;  %v3956_v40 = vadd.f32 %v3955_v38, %v3954_v36 }
 0x197   : > { %v1335_v42 = vadd.f32 %v3956_v40, %v3921_v39 }
 0x1a8   : > { %v1404_v43 = vpop.f32.mrf.mxu1 }
 0x1a9   : > { %v1405_v45 = vadd.f32 %v1404_v43, %v1335_v42 }
 0x1aa   : > { %v4105_v46 = vpop.f32.mrf.mxu1 }
 0x1ab   : > { %v4924_v47 = vadd.f32 %v1405_v45, %v1096_v44 }
 0x1ad   : > { %4115 = vmatmul.mubr.msk.f32.vlgmr.msra.gmra.mxu0 %vm1025_vm1, %v4924_v47 }
 0x1ae   : > { %4119 = vmatprep.mubr.msk.f32.mxu0 %vm4559_vm0, %v4558_v2 }
 0x26d   : > { %v1521_v49 = vpop.f32.mrf.mxu0 }
 0x26e   : > { %v4931_v50 = vadd.f32 %v3829_v48, %v1521_v49 }
 0x26f   : > { %v4116_v51 = vpop.f32.mrf.mxu0 }
 0x270   : > { %1526 = vrot.lane.b32.xlu0 %v4931_v50, %s4561_s10 }
 0x274   : > { %1622 = vrot.lane.b32.xlu0 %v4931_v50, %s5308_s15  ;;  %s5348_s15 = sld [smem:[#allocation15_spill]] }
 0x278   : > { %1698 = vrot.lane.b32.xlu0 %v4931_v50, %s4563_s16 }
 0x27c   : > { %1867 = vrot.lane.b32.xlu0 %v4931_v50, %s5298_s5  ;;  %s1012_s5 = scalar_lea.vmem %s4594_s13, %s4801_s26  ;;  %s5299_s26 = smov 104  }
 0x27d   : > { %v4961_v58 = vld [vmem:[%s1012_s5] ss:$0 sm:$0xff]  ;;  %s4567_s5 = smov 88  }
 0x280   : > { %1865 = vrot.lane.b32.xlu0 %v4931_v50, %s5303_s3  ;;  %s5306_s3 = smov 16  }
 0x284   : > { %2034 = vrot.lane.b32.xlu0 %v4931_v50, %s5300_s9  ;;  %s5301_s9 = smov 40  }
 0x2e2   : > { %v1527_v52 = vpop.permute.xlu0 %1526 }
 0x2e3   : > { %4118 = vmatpush3.xpose.msk.msra.mxu0 %vm1528_vm8, %v1527_v52 }
 0x2e4   : > { %4122 = vmatprep.subr.mxu0 %v4558_v2 }
 0x2e6   : > { %4120 = vmatmul.mubr.msk.f32.vlgmr.msra.gmra.mxu0 %vm1528_vm8, %v4931_v50  ;;  %v1623_v53 = vpop.permute.xlu0 %1622 }
 0x2e7   : > { %4123 = vmatpush3.msra.mxu0 %v1623_v53  ;;  %4124 = vmatprep.mubr.msk.f32.mxu0 %vm4559_vm0, %v4558_v2 }
 0x2e8   : > { %4127 = vmatprep.subr.mxu0 %v4558_v2 }
 0x2ea   : > { %v1699_v54 = vpop.permute.xlu0 %1698 }
 0x2ee   : > { %v1868_v55 = vpop.permute.xlu0 %1867 }
 0x2ef   : > { %4138 = vmatpush3.xpose.msk.msra.mxu1 %vm1528_vm8, %v1868_v55 }
 0x2f0   : > { %4147 = vmatprep.subr.mxu1 %v4558_v2 }
 0x2f2   : > { %v1866_v56 = vpop.permute.xlu0 %1865 }
 0x2f3   : > { %4140 = vmatmul.mubr.msk.f32.vlgmr.msra.gmra.mxu1 %vm1528_vm8, %v1866_v56 }
 0x2f4   : > { %4149 = vmatprep.mubr.msk.f32.mxu1 %vm4559_vm0, %v4558_v2 }
 0x2f6   : > { %v2035_v57 = vpop.permute.xlu0 %2034 }
 0x2f7   : > { %4148 = vmatpush3.xpose.msk.msra.mxu1 %vm1528_vm8, %v2035_v57 }
 0x2f8   : > { %4179 = vmatprep.subr.mxu1 %v4558_v2 }
 0x3a6   : > { %v1599_v59 = vpop.f32.mrf.mxu0 }
 0x3a7   : > { %v1603_v60 = vmul.f32 0.35355338, %v1599_v59  ;;  %v1418_v59 = vld [vmem:[%s5335_s8 + $0x18] sm:$0xff] }
 0x3a8   : > { %v4121_v61 = vpop.f32.mrf.mxu0 }
 0x3a9   : > { %v1610_v62 = vadd.f32 %v4961_v58, %v1603_v60  ;;  %v1417_v60 = vld [vmem:[%s5335_s8 + $0x10] sm:$0xff]  ;;  %v1416_v61 = vld [vmem:[%s5335_s8 + $0x8] sm:$0xff] }
 0x3ab   : > { %v1611_v63 = vsel %vm1528_vm8, %v1610_v62, -inf }
 0x3ac   : > { %1612 = vmax.xlane.f32.xlu1 %v1611_v63 }
 0x3b3   : > { %v1939_v0 = vpop.f32.mrf.mxu1 }
 0x3b4   : > { %v1943_v8 = vmul.f32 0.35355338, %v1939_v0 }
 0x3b5   : > { %v4141_v1 = vpop.f32.mrf.mxu1 }
 0x3b6   : > { %v1944_v11 = vadd.f32 %v4961_v58, %v1943_v8 }
 0x3b8   : > { %v1945_v12 = vsel %vm1528_vm8, %v1944_v11, -inf }
 0x435   : > { %v1613_v3 = vpop.xlane.xlu1 %1612 }
 0x436   : > { %v1614_v4 = vsub.f32 %v1610_v62, %v1613_v3  ;;  %v1415_v62 = vld [vmem:[%s5335_s8] sm:$0xff] }
 0x438   : > { %v1615_v5 = vmul.f32 1.442695, %v1614_v4 }
 0x43a   : > { %4423 = vpow2.f32 %v1615_v5 }
 0x447   : > { %v4424_v6 = vpop.eup %4423 }
 0x448   : > { %v1617_v7 = vsel %vm1528_vm8, %v4424_v6, 0.0 }
 0x449   : > { %1618 = vadd.xlane.f32.xlu1 %v1617_v7 }
 0x45a   : > { %1700 = vrot.lane.b32.xlu1 %v4931_v50, %s4567_s5 }
 0x45e   : > { %2032 = vrot.lane.b32.xlu1 %v4931_v50, %s5299_s26  ;;  %s5304_s26 = smov 56  }
 0x482   : > { %1946 = vmax.xlane.f32.xlu1 %v1945_v12 }
 0x4d2   : > { %v1619_v13 = vpop.xlane.xlu1 %1618 }
 0x4d3   : > { %4425 = vrcp.f32 %v1619_v13 }
 0x4d6   : > { %v1701_v14 = vpop.permute.xlu1 %1700 }
 0x4da   : > { %v2033_v15 = vpop.permute.xlu1 %2032 }
 0x4db   : > { %4150 = vmatmul.mubr.msk.f32.vlgmr.msra.gmra.mxu1 %vm1528_vm8, %v2033_v15 }
 0x4dc   : > { %4211 = vmatprep.mubr.msk.f32.mxu1 %vm4559_vm0, %v4558_v2 }
 0x4e0   : > { %v4426_v16 = vpop.eup %4425 }
 0x4e1   : > { %v1621_v17 = vmul.f32 %v4426_v16, %v4424_v6 }
 0x4e3   : > { %4125 = vmatmul.mubr.msk.f32.vlgmr.msra.gmra.mxu0 %vm1528_vm8, %v1621_v17 }
 0x4e4   : > { %4128 = vmatpush3.xpose.msk.msra.mxu0 %vm1528_vm8, %v1701_v14  ;;  %4129 = vmatprep.mubr.msk.f32.mxu0 %vm4559_vm0, %v4558_v2  ;;  %v3844_v14 = vld [vmem:[%s4629_s14] ss:$0 sm:$0xff] }
 0x4e5   : > { %4132 = vmatprep.subr.mxu0 %v4558_v2 }
 0x4e7   : > { %4130 = vmatmul.mubr.msk.f32.vlgmr.msra.gmra.mxu0 %vm1528_vm8, %v1699_v54 }
 0x4e8   : > { %4134 = vmatprep.mubr.msk.f32.mxu0 %vm4559_vm0, %v4558_v2 }
 0x50b   : > { %v1947_v18 = vpop.xlane.xlu1 %1946 }
 0x50c   : > { %v1948_v19 = vsub.f32 %v1944_v11, %v1947_v18 }
 0x50e   : > { %v1949_v20 = vmul.f32 1.442695, %v1948_v19 }
 0x510   : > { %4427 = vpow2.f32 %v1949_v20 }
 0x51d   : > { %v4428_v21 = vpop.eup %4427 }
 0x51e   : > { %v1951_v22 = vsel %vm1528_vm8, %v4428_v21, 0.0 }
 0x51f   : > { %1952 = vadd.xlane.f32.xlu1 %v1951_v22 }
 0x530   : > { %1789 = vrot.lane.b32.xlu1 %v4931_v50, %s5304_s26  ;;  %s5305_s26 = smov 24  }
 0x534   : > { %2123 = vrot.lane.b32.xlu1 %v4931_v50, %s5301_s9  ;;  %s5302_s9 = smov 48  }
 0x59b   : > { %v2106_v23 = vpop.f32.mrf.mxu1 }
 0x59c   : > { %v2110_v28 = vmul.f32 0.35355338, %v2106_v23 }
 0x59d   : > { %v4151_v24 = vpop.f32.mrf.mxu1 }
 0x59e   : > { %v2111_v35 = vadd.f32 %v4961_v58, %v2110_v28  ;;  %v1440_v28 = vld [vmem:[%s4644_s30 + $0x78] sm:$0xff] }
 0x59f   : > { %4180 = vmatpush3.msra.mxu1 %v1440_v28 }
 0x5a0   : > { %v2112_v36 = vsel %vm1528_vm8, %v2111_v35, -inf  ;;  %4181 = vmatprep.subr.mxu1 %v4558_v2 }
 0x5a3   : > { %v4988_v25 = vpop.f32.mrf.mxu0 }
 0x5a5   : > { %v4126_v26 = vpop.f32.mrf.mxu0 }
 0x5a6   : > { %v1422_v26 = vld [vmem:[%s4634_s19 + $0x10] sm:$0xff] }
 0x5a7   : > { %v1772_v27 = vpop.f32.mrf.mxu0 }
 0x5a8   : > { %v1776_v29 = vmul.f32 0.35355338, %v1772_v27  ;;  %v1953_v30 = vpop.xlane.xlu1 %1952  ;;  %v1420_v27 = vld [vmem:[%s4634_s19] sm:$0xff] }
 0x5a9   : > { %v4131_v31 = vpop.f32.mrf.mxu0 }
 0x5aa   : > { %v1777_v32 = vadd.f32 %v4961_v58, %v1776_v29  ;;  %v1439_v29 = vld [vmem:[%s4644_s30 + $0x70] sm:$0xff]  ;;  %v1437_v31 = vld [vmem:[%s4644_s30 + $0x60] sm:$0xff] }
 0x5ab   : > { %4182 = vmatpush3.msra.mxu1 %v1439_v29 }
 0x5ac   : > { %v1790_v33 = vpop.permute.xlu1 %1789  ;;  %v1778_v34 = vsel %vm1528_vm8, %v1777_v32, -inf  ;;  %4183 = vmatprep.subr.mxu1 %v4558_v2 }
 0x5ad   : > { %4133 = vmatpush3.msra.mxu0 %v1790_v33  ;;  %1779 = vmax.xlane.f32.xlu0 %v1778_v34  ;;  %v1435_v33 = vld [vmem:[%s4644_s30 + $0x50] sm:$0xff]  ;;  %v1434_v34 = vld [vmem:[%s4644_s30 + $0x48] sm:$0xff] }
 0x5ae   : > { %4142 = vmatprep.subr.mxu0 %v4558_v2 }
 0x5b0   : > { %v2124_v56 = vpop.permute.xlu1 %2123 }
 0x5b1   : > { %2113 = vmax.xlane.f32.xlu0 %v2112_v36  ;;  %v1432_v36 = vld [vmem:[%s4644_s30 + $0x38] sm:$0xff] }
 0x636   : > { %v1780_v37 = vpop.xlane.xlu0 %1779 }
 0x637   : > { %v1781_v38 = vsub.f32 %v1777_v32, %v1780_v37  ;;  %v1436_v32 = vld [vmem:[%s4644_s30 + $0x58] sm:$0xff]  ;;  %v1431_v37 = vld [vmem:[%s4644_s30 + $0x30] sm:$0xff] }
 0x639   : > { %v1782_v41 = vmul.f32 1.442695, %v1781_v38  ;;  %v1430_v38 = vld [vmem:[%s4644_s30 + $0x28] sm:$0xff] }
 0x63a   : > { %v2114_v39 = vpop.xlane.xlu0 %2113 }
 0x63b   : > { %v2115_v40 = vsub.f32 %v2111_v35, %v2114_v39  ;;  %v1433_v35 = vld [vmem:[%s4644_s30 + $0x40] sm:$0xff] }
 0x63c   : > { %v1429_v39 = vld [vmem:[%s4644_s30 + $0x20] sm:$0xff] }
 0x63d   : > { %v2116_v42 = vmul.f32 1.442695, %v2115_v40  ;;  %v1428_v40 = vld [vmem:[%s4644_s30 + $0x18] sm:$0xff] }
 0x63f   : > { %4429 = vpow2.f32 %v2116_v42 }
 0x640   : > { %4431 = vpow2.f32 %v1782_v41 }
 0x64c   : > { %v4430_v43 = vpop.eup %4429 }
 0x64d   : > { %v2118_v44 = vsel %vm1528_vm8, %v4430_v43, 0.0  ;;  %v4432_v45 = vpop.eup %4431 }
 0x64e   : > { %2119 = vadd.xlane.f32.xlu0 %v2118_v44  ;;  %v1784_v46 = vsel %vm1528_vm8, %v4432_v45, 0.0 }
 0x652   : > { %1785 = vadd.xlane.f32.xlu0 %v1784_v46 }
 0x668   : > { %1956 = vrot.lane.b32.xlu0 %v4931_v50, %s5302_s9  ;;  %s5307_s9 = smov 8  }
 0x6d7   : > { %v2120_v48 = vpop.xlane.xlu0 %2119 }
 0x6db   : > { %v1786_v49 = vpop.xlane.xlu0 %1785 }
 0x6dc   : > { %4433 = vrcp.f32 %v1786_v49 }
 0x6dd   : > { %4435 = vrcp.f32 %v1953_v30  ;;  %v1438_v30 = vld [vmem:[%s4644_s30 + $0x68] sm:$0xff] }
 0x6de   : > { %4437 = vrcp.f32 %v2120_v48  ;;  %4184 = vmatpush3.msra.mxu1 %v1438_v30  ;;  %v3847_v48 = vld [vmem:[%s4659_s20] ss:$0 sm:$0xff] }
 0x6df   : > { %v1957_v54 = vpop.permute.xlu0 %1956  ;;  %4185 = vmatprep.subr.mxu1 %v4558_v2 }
 0x6e0   : > { %4186 = vmatpush3.msra.mxu1 %v1437_v31 }
 0x6e1   : > { %4187 = vmatprep.subr.mxu1 %v4558_v2 }
 0x6e2   : > { %4188 = vmatpush3.msra.mxu1 %v1436_v32 }
 0x6e3   : > { %4189 = vmatprep.subr.mxu1 %v4558_v2 }
 0x6e4   : > { %4190 = vmatpush3.msra.mxu1 %v1435_v33 }
 0x6e5   : > { %4191 = vmatprep.subr.mxu1 %v4558_v2 }
 0x6e6   : > { %4192 = vmatpush3.msra.mxu1 %v1434_v34 }
 0x6e7   : > { %4193 = vmatprep.subr.mxu1 %v4558_v2 }
 0x6e8   : > { %4194 = vmatpush3.msra.mxu1 %v1433_v35 }
 0x6e9   : > { %v4434_v51 = vpop.eup %4433  ;;  %4195 = vmatprep.subr.mxu1 %v4558_v2 }
 0x6ea   : > { %v1788_v52 = vmul.f32 %v4434_v51, %v4432_v45  ;;  %v4436_v53 = vpop.eup %4435  ;;  %4196 = vmatpush3.msra.mxu1 %v1432_v36  ;;  %v3846_v45 = vld [vmem:[%s5342_s12] ss:$0 sm:$0xff] }
 0x6eb   : > { %v1955_v50 = vmul.f32 %v4436_v53, %v4428_v21  ;;  %v4438_v55 = vpop.eup %4437  ;;  %4197 = vmatprep.subr.mxu1 %v4558_v2  ;;  %v1426_v53 = vld [vmem:[%s4644_s30 + $0x8] sm:$0xff] }
 0x6ec   : > { %4135 = vmatmul.mubr.msk.f32.vlgmr.msra.gmra.mxu0 %vm1528_vm8, %v1788_v52  ;;  %v2122_v57 = vmul.f32 %v4438_v55, %v4430_v43  ;;  %4198 = vmatpush3.msra.mxu1 %v1431_v37  ;;  %v1427_v52 = vld [vmem:[%s4644_s30 + $0x10] sm:$0xff] }
 0x6ed   : > { %4143 = vmatpush3.msra.mxu0 %v1957_v54  ;;  %4144 = vmatprep.mubr.msk.f32.mxu0 %vm4559_vm0, %v4558_v2  ;;  %v1425_v54 = vld [vmem:[%s4644_s30] sm:$0xff] }
 0x6ee   : > { %4152 = vmatprep.subr.mxu0 %v4558_v2  ;;  %4199 = vmatprep.subr.mxu1 %v4558_v2 }
 0x6ef   : > { %4200 = vmatpush3.msra.mxu1 %v1430_v38 }
 0x6f0   : > { %4145 = vmatmul.mubr.msk.f32.vlgmr.msra.gmra.mxu0 %vm1528_vm8, %v1955_v50  ;;  %4201 = vmatprep.subr.mxu1 %v4558_v2 }
 0x6f1   : > { %4153 = vmatpush3.msra.mxu0 %v2124_v56  ;;  %4154 = vmatprep.mubr.msk.f32.mxu0 %vm4559_vm0, %v4558_v2 }
 0x6f2   : > { %4157 = vmatprep.subr.mxu0 %v4558_v2  ;;  %4202 = vmatpush3.msra.mxu1 %v1429_v39 }
 0x6f3   : > { %4203 = vmatprep.subr.mxu1 %v4558_v2 }
 0x6f4   : > { %4155 = vmatmul.mubr.msk.f32.vlgmr.msra.gmra.mxu0 %vm1528_vm8, %v2122_v57  ;;  %4204 = vmatpush3.msra.mxu1 %v1428_v40 }
 0x6f5   : > { %4165 = vmatprep.mubr.msk.f32.mxu0 %vm4559_vm0, %v4558_v2  ;;  %4158 = vmatpush3.msra.mxu0 %v1418_v59 }
 0x6f6   : > { %4159 = vmatprep.subr.mxu0 %v4558_v2  ;;  %4205 = vmatprep.subr.mxu1 %v4558_v2 }
 0x6f7   : > { %4160 = vmatpush3.msra.mxu0 %v1417_v60  ;;  %4206 = vmatpush3.msra.mxu1 %v1427_v52 }
 0x6f8   : > { %4161 = vmatprep.subr.mxu0 %v4558_v2  ;;  %4207 = vmatprep.subr.mxu1 %v4558_v2 }
 0x6f9   : > { %4162 = vmatpush3.msra.mxu0 %v1416_v61  ;;  %4208 = vmatpush3.msra.mxu1 %v1426_v53 }
 0x6fa   : > { %4163 = vmatprep.subr.mxu0 %v4558_v2  ;;  %4209 = vmatprep.subr.mxu1 %v4558_v2 }
 0x6fb   : > { %4164 = vmatpush3.msra.mxu0 %v1415_v62  ;;  %4210 = vmatpush3.msra.mxu1 %v1425_v54 }
 0x6fc   : > { %4168 = vmatprep.subr.mxu0 %v4558_v2  ;;  %4255 = vmatprep.subr.mxu1 %v4558_v2 }
 0x7ac   : > { %v1861_v63 = vpop.f32.mrf.mxu0 }
 0x7ad   : > { %2200 = vrot.lane.b32.xlu1 %v1861_v63, %s5307_s9  ;;  %s5345_s9 = sld [smem:[#allocation14_spill]] }
 0x7ae   : > { %v4136_v0 = vpop.f32.mrf.mxu0 }
 0x7b0   : > { %v2028_v1 = vpop.f32.mrf.mxu0 }
 0x7b1   : > { %2204 = vrot.lane.b32.xlu0 %v2028_v1, %s5306_s3  ;;  %s5344_s3 = sld [smem:[#allocation10_spill]] }
 0x7b2   : > { %v4146_v3 = vpop.f32.mrf.mxu0 }
 0x7b4   : > { %v2195_v4 = vpop.f32.mrf.mxu0 }
 0x7b5   : > { %2208 = vrot.lane.b32.xlu1 %v2195_v4, %s5305_s26  ;;  %s5343_s26 = sld [smem:[#allocation9_spill]] }
 0x7b6   : > { %v4156_v5 = vpop.f32.mrf.mxu0 }
 0x7b7   : > { %v3850_v60 = vld [vmem:[%s5344_s3] ss:$0 sm:$0xff]  ;;  %s5347_s3 = sld [smem:[#allocation13_spill]] }
 0x7bb   : > { %v3848_v50 = vld [vmem:[%s5343_s26] ss:$0 sm:$0xff]  ;;  %s5346_s26 = sld [smem:[#allocation12_spill]] }
 0x81f   : > { %v2201_v6 = vpop.permute.xlu1 %2200 }
 0x820   : > { %v2211_v8 = vsel %vm1528_vm8, %v4988_v25, %v2201_v6  ;;  %v1423_v25 = vld [vmem:[%s4634_s19 + $0x18] sm:$0xff] }
 0x823   : > { %v2205_v7 = vpop.permute.xlu0 %2204 }
 0x824   : > { %v2213_v11 = vsel %vm2212_vm9, %v2211_v8, %v2205_v7  ;;  %v2511_v8 = vld [vmem:[%s5345_s9 + $0x18] sm:$0xff] }
 0x827   : > { %v2209_v12 = vpop.permute.xlu1 %2208 }
 0x828   : > { %v2215_v13 = vsel %vm2214_vm10, %v2213_v11, %v2209_v12  ;;  %v2510_v11 = vld [vmem:[%s5345_s9 + $0x10] sm:$0xff]  ;;  %v2509_v12 = vld [vmem:[%s5345_s9 + $0x8] sm:$0xff] }
 0x829   : > { %4166 = vmatmul.mubr.msk.f32.vlgmr.msra.gmra.mxu0 %vm1025_vm1, %v2215_v13  ;;  %v2508_v13 = vld [vmem:[%s5345_s9] sm:$0xff] }
 0x82a   : > { %4176 = vmatprep.mubr.msk.f32.mxu0 %vm4559_vm0, %v4558_v2  ;;  %4169 = vmatpush3.msra.mxu0 %v1423_v25 }
 0x82b   : > { %4170 = vmatprep.subr.mxu0 %v4558_v2 }
 0x82c   : > { %4171 = vmatpush3.msra.mxu0 %v1422_v26 }
 0x82d   : > { %4172 = vmatprep.subr.mxu0 %v4558_v2 }
 0x8e9   : > { %v2291_v15 = vpop.f32.mrf.mxu0 }
 0x8ea   : > { %v2292_v16 = vadd.f32 %v3844_v14, %v2291_v15 }
 0x8eb   : > { %v4167_v17 = vpop.f32.mrf.mxu0 }
 0x8ec   : > { %v2295_v18 = vadd.f32 %v2292_v16, %v4924_v47  ;;  %v1421_v47 = vld [vmem:[%s4634_s19 + $0x8] sm:$0xff] }
 0x8ed   : > { %4173 = vmatpush3.msra.mxu0 %v1421_v47 }
 0x8ee   : > { %v2296_v19 = vsel %vm1025_vm1, %v2295_v18, 0.0  ;;  %4174 = vmatprep.subr.mxu0 %v4558_v2 }
 0x8ef   : > { %2297 = vadd.xlane.f32.xlu0 %v2296_v19  ;;  %4175 = vmatpush3.msra.mxu0 %v1420_v27 }
 0x8f0   : > { %4214 = vmatprep.subr.mxu0 %v4558_v2 }
 0x978   : > { %v2298_v20 = vpop.xlane.xlu0 %2297 }
 0x979   : > { %v2300_v21 = vmul.f32 0.03125, %v2298_v20  ;;  %v3852_v20 = vld [vmem:[%s5347_s3] ss:$0 sm:$0xff]  ;;  %s5354_s3 = smov 104  }
 0x97b   : > { %v2301_v22 = vsub.f32 %v2295_v18, %v2300_v21  ;;  %v3851_v18 = vld [vmem:[%s5346_s26] ss:$0 sm:$0xff]  ;;  %s5353_s26 = smov 80  }
 0x97d   : > { %v2302_v23 = vmul.f32 %v2301_v22, %v2301_v22 }
 0x97f   : > { %v2303_v24 = vsel %vm1025_vm1, %v2302_v23, 0.0  ;;  %v3853_v23 = vld [vmem:[%s5348_s15] ss:$0 sm:$0xff]  ;;  %s5350_s15 = smov 56  }
 0x980   : > { %2304 = vadd.xlane.f32.xlu1 %v2303_v24 }
 0xa09   : > { %v2305_v41 = vpop.xlane.xlu1 %2304 }
 0xa0a   : > { %v2306_v42 = vmul.f32 0.03125, %v2305_v41 }
 0xa0c   : > { %v2307_v43 = vadd.f32 1e-05, %v2306_v42 }
 0xa0e   : > { %4439 = vrsqrt.f32 %v2307_v43 }
 0xa1b   : > { %v4440_v44 = vpop.eup %4439 }
 0xa1c   : > { %v2309_v46 = vmul.f32 %v4440_v44, %v2301_v22 }
 0xa1e   : > { %v2316_v49 = vmul.f32 %v3846_v45, %v2309_v46 }
 0xa20   : > { %v2323_v51 = vadd.f32 %v3847_v48, %v2316_v49 }
 0xa22   : > { %4177 = vmatmul.mubr.msk.f32.vlgmr.msra.gmra.mxu0 %vm1025_vm1, %v2323_v51 }
 0xa23   : > { %4222 = vmatprep.mubr.msk.f32.mxu0 %vm4559_vm0, %v4558_v2  ;;  %4215 = vmatpush3.msra.mxu0 %v2511_v8 }
 0xa24   : > { %4216 = vmatprep.subr.mxu0 %v4558_v2 }
 0xa25   : > { %4217 = vmatpush3.msra.mxu0 %v2510_v11 }
 0xa26   : > { %4218 = vmatprep.subr.mxu0 %v4558_v2 }
 0xa27   : > { %4219 = vmatpush3.msra.mxu0 %v2509_v12 }
 0xa28   : > { %4220 = vmatprep.subr.mxu0 %v4558_v2 }
 0xa29   : > { %4221 = vmatpush3.msra.mxu0 %v2508_v13 }
 0xa2a   : > { %4225 = vmatprep.subr.mxu0 %v4558_v2 }
 0xae2   : > { %v2399_v55 = vpop.f32.mrf.mxu0 }
 0xae3   : > { %v2400_v56 = vadd.f32 %v3848_v50, %v2399_v55 }
 0xae4   : > { %v4178_v57 = vpop.f32.mrf.mxu0 }
 0xae5   : > { %v2403_v59 = vmax.f32 %v2400_v56, 0.0 }
 0xae7   : > { %4212 = vmatmul.mubr.f32.vlgmr.msra.gmra.mxu1 %v2403_v59 }
 0xae8   : > { %4257 = vmatprep.mubr.msk.f32.mxu1 %vm4559_vm0, %v4558_v2 }
 0xba7   : > { %v2476_v61 = vpop.f32.mrf.mxu1 }
 0xba8   : > { %v2477_v62 = vadd.f32 %v3850_v60, %v2476_v61 }
 0xba9   : > { %v4213_v63 = vpop.f32.mrf.mxu1 }
 0xbaa   : > { %v2480_v0 = vadd.f32 %v2477_v62, %v2323_v51 }
 0xbac   : > { %v2481_v1 = vsel %vm1025_vm1, %v2480_v0, 0.0 }
 0xbad   : > { %2482 = vadd.xlane.f32.xlu0 %v2481_v1 }
 0xc36   : > { %v2483_v3 = vpop.xlane.xlu0 %2482 }
 0xc37   : > { %v2484_v4 = vmul.f32 0.03125, %v2483_v3 }
 0xc39   : > { %v2485_v5 = vsub.f32 %v2480_v0, %v2484_v4 }
 0xc3b   : > { %v2486_v6 = vmul.f32 %v2485_v5, %v2485_v5 }
 0xc3d   : > { %v2487_v7 = vsel %vm1025_vm1, %v2486_v6, 0.0 }
 0xc3e   : > { %2488 = vadd.xlane.f32.xlu0 %v2487_v7 }
 0xcc7   : > { %v2489_v14 = vpop.xlane.xlu0 %2488 }
 0xcc8   : > { %v2490_v15 = vmul.f32 0.03125, %v2489_v14 }
 0xcca   : > { %v2491_v16 = vadd.f32 1e-05, %v2490_v15 }
 0xccc   : > { %4441 = vrsqrt.f32 %v2491_v16 }
 0xcd9   : > { %v4442_v17 = vpop.eup %4441 }
 0xcda   : > { %v2493_v19 = vmul.f32 %v4442_v17, %v2485_v5 }
 0xcdc   : > { %v2500_v21 = vmul.f32 %v3851_v18, %v2493_v19 }
 0xcde   : > { %v5093_v22 = vadd.f32 %v3852_v20, %v2500_v21 }
 0xce0   : > { %4223 = vmatmul.mubr.msk.f32.vlgmr.msra.gmra.mxu0 %vm1025_vm1, %v5093_v22 }
 0xce1   : > { %4227 = vmatprep.mubr.msk.f32.mxu0 %vm4559_vm0, %v4558_v2 }
 0xda0   : > { %v2619_v24 = vpop.f32.mrf.mxu0 }
 0xda1   : > { %v5100_v25 = vadd.f32 %v3853_v23, %v2619_v24 }
 0xda2   : > { %v4224_v26 = vpop.f32.mrf.mxu0 }
 0xda3   : > { %2624 = vrot.lane.b32.xlu1 %v5100_v25, %s4561_s10  ;;  %s5349_s10 = smov 64  }
 0xda7   : > { %2791 = vrot.lane.b32.xlu1 %v5100_v25, %s4567_s5  ;;  %s5352_s5 = smov 72  }
 0xdab   : > { %2789 = vrot.lane.b32.xlu1 %v5100_v25, %s4563_s16  ;;  %s5351_s16 = smov 112  }
 0xe15   : > { %v2625_v47 = vpop.permute.xlu1 %2624 }
 0xe16   : > { %4226 = vmatpush3.xpose.msk.msra.mxu0 %vm1528_vm8, %v2625_v47 }
 0xe17   : > { %4230 = vmatprep.subr.mxu0 %v4558_v2 }
 0xe19   : > { %4228 = vmatmul.mubr.msk.f32.vlgmr.msra.gmra.mxu0 %vm1528_vm8, %v5100_v25  ;;  %v2792_v40 = vpop.permute.xlu1 %2791 }
 0xe1a   : > { %4232 = vmatprep.mubr.msk.f32.mxu0 %vm4559_vm0, %v4558_v2 }
 0xe1d   : > { %v2790_v42 = vpop.permute.xlu1 %2789 }
 0xed9   : > { %v2696_v27 = vpop.f32.mrf.mxu0 }
 0xeda   : > { %v2700_v28 = vmul.f32 0.35355338, %v2696_v27 }
 0xedb   : > { %v4229_v29 = vpop.f32.mrf.mxu0 }
 0xedc   : > { %v2701_v30 = vadd.f32 %v4961_v58, %v2700_v28 }
 0xede   : > { %v2702_v31 = vsel %vm1528_vm8, %v2701_v30, -inf }
 0xedf   : > { %2703 = vmax.xlane.f32.xlu0 %v2702_v31 }
 0xf68   : > { %v2704_v32 = vpop.xlane.xlu0 %2703 }
 0xf69   : > { %v2705_v33 = vsub.f32 %v2701_v30, %v2704_v32 }
 0xf6b   : > { %v2706_v34 = vmul.f32 1.442695, %v2705_v33 }
 0xf6d   : > { %4443 = vpow2.f32 %v2706_v34 }
 0xf7a   : > { %v4444_v35 = vpop.eup %4443 }
 0xf7b   : > { %v2708_v36 = vsel %vm1528_vm8, %v4444_v35, 0.0 }
 0xf7c   : > { %2709 = vadd.xlane.f32.xlu0 %v2708_v36 }
 0xf92   : > { %2713 = vrot.lane.b32.xlu0 %v5100_v25, %s5349_s10  ;;  %s5355_s10 = smov 40  }
0x1005   : > { %v2710_v37 = vpop.xlane.xlu0 %2709 }
0x1006   : > { %4445 = vrcp.f32 %v2710_v37 }
0x1009   : > { %v2714_v38 = vpop.permute.xlu0 %2713 }
0x100a   : > { %4231 = vmatpush3.msra.mxu0 %v2714_v38 }
0x100b   : > { %4235 = vmatprep.subr.mxu0 %v4558_v2 }
0x1013   : > { %v4446_v39 = vpop.eup %4445 }
0x1014   : > { %v2712_v41 = vmul.f32 %v4446_v39, %v4444_v35 }
0x1016   : > { %4233 = vmatmul.mubr.msk.f32.vlgmr.msra.gmra.mxu0 %vm1528_vm8, %v2712_v41 }
0x1017   : > { %4236 = vmatpush3.xpose.msk.msra.mxu0 %vm1528_vm8, %v2792_v40  ;;  %4237 = vmatprep.mubr.msk.f32.mxu0 %vm4559_vm0, %v4558_v2 }
0x1018   : > { %4240 = vmatprep.subr.mxu0 %v4558_v2 }
0x101a   : > { %4238 = vmatmul.mubr.msk.f32.vlgmr.msra.gmra.mxu0 %vm1528_vm8, %v2790_v42 }
0x101b   : > { %4242 = vmatprep.mubr.msk.f32.mxu0 %vm4559_vm0, %v4558_v2 }
0x10d6   : > { %v5128_v43 = vpop.f32.mrf.mxu0 }
0x10d8   : > { %v4234_v44 = vpop.f32.mrf.mxu0 }
0x10da   : > { %v2863_v45 = vpop.f32.mrf.mxu0 }
0x10db   : > { %v2867_v46 = vmul.f32 0.35355338, %v2863_v45 }
0x10dc   : > { %v4239_v48 = vpop.f32.mrf.mxu0 }
0x10dd   : > { %v2868_v49 = vadd.f32 %v4961_v58, %v2867_v46 }
0x10df   : > { %v2869_v51 = vsel %vm1528_vm8, %v2868_v49, -inf }
0x10e0   : > { %2870 = vmax.xlane.f32.xlu1 %v2869_v51 }
0x10f1   : > { %2880 = vrot.lane.b32.xlu1 %v5100_v25, %s5350_s15  ;;  %s5356_s15 = smov 8  }
0x10f5   : > { %2956 = vrot.lane.b32.xlu1 %v5100_v25, %s5351_s16  ;;  %s5357_s16 = smov 48  }
0x10f9   : > { %3125 = vrot.lane.b32.xlu1 %v5100_v25, %s5352_s5  ;;  %s5358_s5 = sld [smem:[#allocation16_spill]] }
0x10ff   : > { %v2516_v33 = vld [vmem:[%s5358_s5 + $0x18] sm:$0xff]  ;;  %v2515_v34 = vld [vmem:[%s5358_s5 + $0x10] sm:$0xff]  ;;  %v2514_v35 = vld [vmem:[%s5358_s5 + $0x8] sm:$0xff] }
0x1100   : > { %v2513_v36 = vld [vmem:[%s5358_s5] sm:$0xff]  ;;  %s5367_s5 = sld [smem:[#allocation21_spill]] }
0x1169   : > { %v2871_v52 = vpop.xlane.xlu1 %2870 }
0x116a   : > { %v2872_v53 = vsub.f32 %v2868_v49, %v2871_v52 }
0x116c   : > { %v2873_v54 = vmul.f32 1.442695, %v2872_v53 }
0x116d   : > { %v2881_v50 = vpop.permute.xlu1 %2880 }
0x116e   : > { %4447 = vpow2.f32 %v2873_v54  ;;  %4241 = vmatpush3.msra.mxu0 %v2881_v50 }
0x116f   : > { %4245 = vmatprep.subr.mxu0 %v4558_v2 }
0x1171   : > { %v2957_v55 = vpop.permute.xlu1 %2956 }
0x1175   : > { %v3126_v56 = vpop.permute.xlu1 %3125 }
0x1176   : > { %4256 = vmatpush3.xpose.msk.msra.mxu1 %vm1528_vm8, %v3126_v56 }
0x1177   : > { %4265 = vmatprep.subr.mxu1 %v4558_v2 }
0x117b   : > { %v4448_v57 = vpop.eup %4447 }
0x117c   : > { %v2875_v59 = vsel %vm1528_vm8, %v4448_v57, 0.0 }
0x117d   : > { %2876 = vadd.xlane.f32.xlu0 %v2875_v59 }
0x1193   : > { %2958 = vrot.lane.b32.xlu0 %v5100_v25, %s5353_s26  ;;  %s5359_s26 = sld [smem:[#allocation17_spill]] }
0x1197   : > { %3123 = vrot.lane.b32.xlu0 %v5100_v25, %s5354_s3  ;;  %s5360_s3 = smov 16  }
0x1199   : > { %v3867_v49 = vld [vmem:[%s5359_s26] ss:$0 sm:$0xff]  ;;  %s5364_s26 = sld [smem:[#allocation22_spill]] }
0x1206   : > { %v2877_v60 = vpop.xlane.xlu0 %2876 }
0x1207   : > { %4449 = vrcp.f32 %v2877_v60 }
0x120a   : > { %v2959_v61 = vpop.permute.xlu0 %2958 }
0x120e   : > { %v3124_v62 = vpop.permute.xlu0 %3123 }
0x120f   : > { %4258 = vmatmul.mubr.msk.f32.vlgmr.msra.gmra.mxu1 %vm1528_vm8, %v3124_v62 }
0x1210   : > { %4273 = vmatprep.mubr.msk.f32.mxu1 %vm4559_vm0, %v4558_v2  ;;  %4266 = vmatpush3.msra.mxu1 %v2516_v33 }
0x1211   : > { %4267 = vmatprep.subr.mxu1 %v4558_v2 }
0x1212   : > { %4268 = vmatpush3.msra.mxu1 %v2515_v34 }
0x1213   : > { %4269 = vmatprep.subr.mxu1 %v4558_v2 }
0x1214   : > { %v4450_v63 = vpop.eup %4449  ;;  %4270 = vmatpush3.msra.mxu1 %v2514_v35 }
0x1215   : > { %v2879_v0 = vmul.f32 %v4450_v63, %v4448_v57  ;;  %4271 = vmatprep.subr.mxu1 %v4558_v2 }
0x1216   : > { %4272 = vmatpush3.msra.mxu1 %v2513_v36 }
0x1217   : > { %4243 = vmatmul.mubr.msk.f32.vlgmr.msra.gmra.mxu0 %vm1528_vm8, %v2879_v0  ;;  %4287 = vmatprep.subr.mxu1 %v4558_v2 }
0x1218   : > { %4246 = vmatpush3.xpose.msk.msra.mxu0 %vm1528_vm8, %v2959_v61  ;;  %4247 = vmatprep.mubr.msk.f32.mxu0 %vm4559_vm0, %v4558_v2 }
0x1219   : > { %4250 = vmatprep.subr.mxu0 %v4558_v2 }
0x121b   : > { %4248 = vmatmul.mubr.msk.f32.vlgmr.msra.gmra.mxu0 %vm1528_vm8, %v2957_v55 }
0x121c   : > { %4252 = vmatprep.mubr.msk.f32.mxu0 %vm4559_vm0, %v4558_v2 }
0x12cf   : > { %v3197_v1 = vpop.f32.mrf.mxu1 }
0x12d0   : > { %v3201_v3 = vmul.f32 0.35355338, %v3197_v1 }
0x12d1   : > { %v4259_v4 = vpop.f32.mrf.mxu1 }
0x12d2   : > { %v3202_v5 = vadd.f32 %v4961_v58, %v3201_v3 }
0x12d4   : > { %v3203_v6 = vsel %vm1528_vm8, %v3202_v5, -inf }
0x12d5   : > { %3204 = vmax.xlane.f32.xlu0 %v3203_v6 }
0x12d7   : > { %v2952_v7 = vpop.f32.mrf.mxu0 }
0x12d9   : > { %v4244_v8 = vpop.f32.mrf.mxu0 }
0x12db   : > { %v3030_v11 = vpop.f32.mrf.mxu0 }
0x12dc   : > { %v3034_v12 = vmul.f32 0.35355338, %v3030_v11 }
0x12dd   : > { %v4249_v13 = vpop.f32.mrf.mxu0 }
0x12de   : > { %v3035_v14 = vadd.f32 %v4961_v58, %v3034_v12 }
0x12e0   : > { %v3036_v15 = vsel %vm1528_vm8, %v3035_v14, -inf }
0x12e1   : > { %3037 = vmax.xlane.f32.xlu1 %v3036_v15 }
0x135e   : > { %v3205_v16 = vpop.xlane.xlu0 %3204 }
0x135f   : > { %v3206_v17 = vsub.f32 %v3202_v5, %v3205_v16 }
0x1361   : > { %v3207_v18 = vmul.f32 1.442695, %v3206_v17 }
0x1363   : > { %4451 = vpow2.f32 %v3207_v18 }
0x136a   : > { %v3038_v19 = vpop.xlane.xlu1 %3037 }
0x136b   : > { %v3039_v20 = vsub.f32 %v3035_v14, %v3038_v19  ;;  %v3869_v19 = vld [vmem:[%s5364_s26] ss:$0 sm:$0xff]  ;;  %s5368_s26 = sld [smem:[#allocation24_spill]] }
0x136d   : > { %v3040_v21 = vmul.f32 1.442695, %v3039_v20 }
0x136f   : > { %4453 = vpow2.f32 %v3040_v21 }
0x1370   : > { %v4452_v23 = vpop.eup %4451 }
0x1371   : > { %v3209_v24 = vsel %vm1528_vm8, %v4452_v23, 0.0 }
0x1372   : > { %3210 = vadd.xlane.f32.xlu1 %v3209_v24 }
0x137c   : > { %v4454_v26 = vpop.eup %4453 }
0x137d   : > { %v3042_v47 = vsel %vm1528_vm8, %v4454_v26, 0.0 }
0x137e   : > { %3043 = vadd.xlane.f32.xlu0 %v3042_v47 }
0x1383   : > { %3214 = vrot.lane.b32.xlu1 %v5100_v25, %s5355_s10  ;;  %s5361_s10 = smov 24  }
0x1387   : > { %3291 = vrot.lane.b32.xlu1 %v2952_v7, %s5356_s15  ;;  %s5362_s15 = sld [smem:[#allocation18_spill]] }
0x138d   : > { %v2521_v60 = vld [vmem:[%s5362_s15 + $0x18] sm:$0xff]  ;;  %v2520_v61 = vld [vmem:[%s5362_s15 + $0x10] sm:$0xff]  ;;  %v2518_v62 = vld [vmem:[%s5362_s15] sm:$0xff] }
0x1394   : > { %3047 = vrot.lane.b32.xlu0 %v5100_v25, %s5357_s16  ;;  %s5363_s16 = sld [smem:[#allocation20_spill]] }
0x139a   : > { %v2538_v63 = vld [vmem:[%s5363_s16 + $0x78] sm:$0xff]  ;;  %v2537_v0 = vld [vmem:[%s5363_s16 + $0x70] sm:$0xff]  ;;  %v2536_v1 = vld [vmem:[%s5363_s16 + $0x68] sm:$0xff] }
0x139b   : > { %v2535_v3 = vld [vmem:[%s5363_s16 + $0x60] sm:$0xff]  ;;  %v2534_v4 = vld [vmem:[%s5363_s16 + $0x58] sm:$0xff]  ;;  %v2533_v5 = vld [vmem:[%s5363_s16 + $0x50] sm:$0xff] }
0x139c   : > { %v2532_v6 = vld [vmem:[%s5363_s16 + $0x48] sm:$0xff]  ;;  %v2531_v7 = vld [vmem:[%s5363_s16 + $0x40] sm:$0xff]  ;;  %v2530_v8 = vld [vmem:[%s5363_s16 + $0x38] sm:$0xff] }
0x139d   : > { %v2529_v11 = vld [vmem:[%s5363_s16 + $0x30] sm:$0xff]  ;;  %v2528_v12 = vld [vmem:[%s5363_s16 + $0x28] sm:$0xff]  ;;  %v2527_v13 = vld [vmem:[%s5363_s16 + $0x20] sm:$0xff] }
0x139e   : > { %v2526_v14 = vld [vmem:[%s5363_s16 + $0x18] sm:$0xff]  ;;  %v2524_v47 = vld [vmem:[%s5363_s16 + $0x8] sm:$0xff] }
0x13fb   : > { %v3211_v58 = vpop.xlane.xlu1 %3210 }
0x13ff   : > { %v3215_v32 = vpop.permute.xlu1 %3214 }
0x1403   : > { %v3292_v41 = vpop.permute.xlu1 %3291 }
0x1404   : > { %v3302_v44 = vsel %vm1528_vm8, %v5128_v43, %v3292_v41 }
0x1407   : > { %v3044_v27 = vpop.xlane.xlu0 %3043 }
0x1408   : > { %4455 = vrcp.f32 %v3044_v27 }
0x1409   : > { %4457 = vrcp.f32 %v3211_v58  ;;  %v2523_v58 = vld [vmem:[%s5363_s16] sm:$0xff] }
0x140b   : > { %v3048_v28 = vpop.permute.xlu0 %3047 }
0x140c   : > { %4251 = vmatpush3.msra.mxu0 %v3048_v28 }
0x140d   : > { %4260 = vmatprep.subr.mxu0 %v4558_v2 }
0x1415   : > { %v4456_v29 = vpop.eup %4455 }
0x1416   : > { %v3046_v30 = vmul.f32 %v4456_v29, %v4454_v26  ;;  %v4458_v31 = vpop.eup %4457  ;;  %v2525_v26 = vld [vmem:[%s5363_s16 + $0x10] sm:$0xff] }
0x1417   : > { %v3213_v25 = vmul.f32 %v4458_v31, %v4452_v23 }
0x1418   : > { %4253 = vmatmul.mubr.msk.f32.vlgmr.msra.gmra.mxu0 %vm1528_vm8, %v3046_v30 }
0x1419   : > { %4261 = vmatpush3.msra.mxu0 %v3215_v32  ;;  %4262 = vmatprep.mubr.msk.f32.mxu0 %vm4559_vm0, %v4558_v2  ;;  %v3873_v32 = vld [vmem:[%s5367_s5] ss:$0 sm:$0xff]  ;;  %s999_s5 = sand.u32 1, %s4515_s1  }
0x141a   : > { %4276 = vmatprep.subr.mxu0 %v4558_v2  ;;  %s3690_s8 = scalar_lea.sflag [#allocation3], %s999_s5 }
0x141c   : > { %4263 = vmatmul.mubr.msk.f32.vlgmr.msra.gmra.mxu0 %vm1528_vm8, %v3213_v25 }
0x141d   : > { %4284 = vmatprep.mubr.msk.f32.mxu0 %vm4559_vm0, %v4558_v2  ;;  %4277 = vmatpush3.msra.mxu0 %v2521_v60 }
0x141e   : > { %4278 = vmatprep.subr.mxu0 %v4558_v2 }
0x141f   : > { %4279 = vmatpush3.msra.mxu0 %v2520_v61  ;;  %v3686_v61 = vsel %vm3685_vm11, 600.0, %v4558_v2 }
0x1420   : > { %4280 = vmatprep.subr.mxu0 %v4558_v2 }
0x14d8   : > { %v3119_v37 = vpop.f32.mrf.mxu0 }
0x14d9   : > { %3295 = vrot.lane.b32.xlu0 %v3119_v37, %s5360_s3  ;;  %s5365_s3 = sld [smem:[#allocation23_spill]] }
0x14da   : > { %v4254_v38 = vpop.f32.mrf.mxu0 }
0x14dc   : > { %v3286_v39 = vpop.f32.mrf.mxu0 }
0x14dd   : > { %3299 = vrot.lane.b32.xlu1 %v3286_v39, %s5361_s10  ;;  %s5366_s10 = sld [smem:[#allocation19_spill]] }
0x14de   : > { %v4264_v40 = vpop.f32.mrf.mxu0 }
0x14df   : > { %v3870_v21 = vld [vmem:[%s5365_s3] ss:$0 sm:$0xff]  ;;  %s3819_s3 = sshll.u32 %s999_s5, 3 }
0x14e3   : > { %v3871_v27 = vld [vmem:[%s5366_s10] ss:$0 sm:$0xff]  ;;  %s3879_s10 = sshll.u32 %s4767_s0, 7  ;;  %s4575_s0 = smov [#allocation2]  }
0x154b   : > { %v3296_v42 = vpop.permute.xlu0 %3295 }
0x154c   : > { %v3303_v45 = vsel %vm2212_vm9, %v3302_v44, %v3296_v42  ;;  %v3599_v42 = vld [vmem:[%s5336_s6 + $0x18] sm:$0xff]  ;;  %v3598_v44 = vld [vmem:[%s5336_s6 + $0x10] sm:$0xff] }
0x154f   : > { %v3300_v46 = vpop.permute.xlu1 %3299 }
0x1550   : > { %v3304_v48 = vsel %vm2214_vm10, %v3303_v45, %v3300_v46  ;;  %v3597_v45 = vld [vmem:[%s5336_s6 + $0x8] sm:$0xff]  ;;  %v3596_v46 = vld [vmem:[%s5336_s6] sm:$0xff]  ;;  %s1001_s6 = scalar_lea.vmem [#allocation2], %s3819_s3  ;;  %s4467_s3 = sshll.u32 %s4575_s0, 4  ;;  %s4468_s3 = int_to_ptr.vmem [resolvable:$false] %s4467_s3 }
0x1551   : > { %4274 = vmatmul.mubr.msk.f32.vlgmr.msra.gmra.mxu1 %vm1025_vm1, %v3304_v48  ;;  %s4469_s12 = scalar_lea.vmem %s4468_s3, 256 }
0x1552   : > { %4319 = vmatprep.mubr.msk.f32.mxu1 %vm4559_vm0, %v4558_v2  ;;  %4288 = vmatpush3.msra.mxu1 %v2538_v63 }
0x1553   : > { %4289 = vmatprep.subr.mxu1 %v4558_v2 }
0x1554   : > { %4290 = vmatpush3.msra.mxu1 %v2537_v0 }
0x1555   : > { %4291 = vmatprep.subr.mxu1 %v4558_v2 }
0x1556   : > { %4292 = vmatpush3.msra.mxu1 %v2536_v1 }
0x1557   : > { %4293 = vmatprep.subr.mxu1 %v4558_v2 }
0x1558   : > { %4294 = vmatpush3.msra.mxu1 %v2535_v3 }
0x1559   : > { %4295 = vmatprep.subr.mxu1 %v4558_v2 }
0x155a   : > { %4296 = vmatpush3.msra.mxu1 %v2534_v4 }
0x155b   : > { %4297 = vmatprep.subr.mxu1 %v4558_v2 }
0x155c   : > { %4298 = vmatpush3.msra.mxu1 %v2533_v5 }
0x155d   : > { %4299 = vmatprep.subr.mxu1 %v4558_v2 }
0x155e   : > { %4300 = vmatpush3.msra.mxu1 %v2532_v6 }
0x155f   : > { %4301 = vmatprep.subr.mxu1 %v4558_v2 }
0x1560   : > { %4302 = vmatpush3.msra.mxu1 %v2531_v7 }
0x1561   : > { %4303 = vmatprep.subr.mxu1 %v4558_v2 }
0x1562   : > { %4304 = vmatpush3.msra.mxu1 %v2530_v8 }
0x1563   : > { %4305 = vmatprep.subr.mxu1 %v4558_v2 }
0x1564   : > { %4306 = vmatpush3.msra.mxu1 %v2529_v11 }
0x1565   : > { %4307 = vmatprep.subr.mxu1 %v4558_v2 }
0x1566   : > { %4308 = vmatpush3.msra.mxu1 %v2528_v12 }
0x1567   : > { %4309 = vmatprep.subr.mxu1 %v4558_v2 }
0x1568   : > { %4310 = vmatpush3.msra.mxu1 %v2527_v13 }
0x1569   : > { %4311 = vmatprep.subr.mxu1 %v4558_v2 }
0x156a   : > { %4312 = vmatpush3.msra.mxu1 %v2526_v14 }
0x156b   : > { %4313 = vmatprep.subr.mxu1 %v4558_v2 }
0x156c   : > { %4314 = vmatpush3.msra.mxu1 %v2525_v26 }
0x156d   : > { %4315 = vmatprep.subr.mxu1 %v4558_v2 }
0x156e   : > { %4316 = vmatpush3.msra.mxu1 %v2524_v47 }
0x156f   : > { %4317 = vmatprep.subr.mxu1 %v4558_v2 }
0x1570   : > { %4318 = vmatpush3.msra.mxu1 %v2523_v58 }
0x1611   : > { %v3380_v51 = vpop.f32.mrf.mxu1 }
0x1612   : > { %v3381_v52 = vadd.f32 %v3867_v49, %v3380_v51 }
0x1613   : > { %v4275_v53 = vpop.f32.mrf.mxu1 }
0x1614   : > { %v3384_v54 = vadd.f32 %v3381_v52, %v5093_v22  ;;  %v2519_v22 = vld [vmem:[%s5362_s15 + $0x8] sm:$0xff]  ;;  %v3874_v53 = vld [vmem:[%s5368_s26] ss:$0 sm:$0xff]  ;;  %s3703_s26 = sshll.u32 %s1001_s6, 4  ;;  %s3704_s26 = int_to_ptr.vmem [resolvable:$true] %s3703_s26 }
0x1615   : > { %4281 = vmatpush3.msra.mxu0 %v2519_v22  ;;  %s4463_s9 = scalar_lea.vmem %s3704_s26, 128  ;;  %p4470_p0 = scmp.lt.s32.totalorder %s3704_s26, %s4468_s3 }
0x1616   : > { %v3385_v43 = vsel %vm1025_vm1, %v3384_v54, 0.0  ;;  %4282 = vmatprep.subr.mxu0 %v4558_v2  ;;  %p4464_p11 = scmp.ne.s32.totalorder %s3704_s26, %s4463_s9  ;;  %p4471_p1 = scmp.lt.s32.totalorder %s4469_s12, %s4463_s9 }
0x1617   : > { %3386 = vadd.xlane.f32.xlu0 %v3385_v43  ;;  %4283 = vmatpush3.msra.mxu0 %v2518_v62  ;;  %v3875_v43 = vld [vmem:[%s5369_s4] ss:$0 sm:$0xff]  ;;  %s5262_s4 = scalar_lea.hbm %s4744_s27, %s3879_s10 }
0x1618   : > { %4322 = vmatprep.subr.mxu0 %v4558_v2  ;;  %p4465_p12 = pnand %p4464_p11, %p4784_p5  ;;  %p4472_p2 = por %p4471_p1, %p4470_p0 }
0x161a   : > { %p4466_p13 = pneg %p4465_p12 }
0x161c   : > { %p4473_p3 = pnand %p4472_p2, %p4466_p13 }
0x16a0   : > { %v3387_v50 = vpop.xlane.xlu0 %3386 }
0x16a1   : > { %v3388_v55 = vmul.f32 0.03125, %v3387_v50 }
0x16a3   : > { %v3389_v56 = vsub.f32 %v3384_v54, %v3388_v55 }
0x16a5   : > { %v3390_v57 = vmul.f32 %v3389_v56, %v3389_v56 }
0x16a7   : > { %v3391_v59 = vsel %vm1025_vm1, %v3390_v57, 0.0  ;;  %v3876_v57 = vld [vmem:[%s4739_s24] ss:$0 sm:$0xff] }
0x16a8   : > { %3392 = vadd.xlane.f32.xlu1 %v3391_v59 }
0x1731   : > { %v3393_v15 = vpop.xlane.xlu1 %3392 }
0x1732   : > { %v3394_v16 = vmul.f32 0.03125, %v3393_v15 }
0x1734   : > { %v3395_v17 = vadd.f32 1e-05, %v3394_v16 }
0x1736   : > { %4459 = vrsqrt.f32 %v3395_v17 }
0x1743   : > { %v4460_v18 = vpop.eup %4459 }
0x1744   : > { %v3397_v20 = vmul.f32 %v4460_v18, %v3389_v56  ;;  %v3681_v56 = vshrl.u32 %v1100_v9, 7 }
0x1746   : > { %v3404_v23 = vmul.f32 %v3869_v19, %v3397_v20  ;;  %vm3682_vm12 = vcmp.eq.s32.totalorder %v3681_v56, 0  ;;  %vm3684_vm13 = vcmp.eq.s32.totalorder %v3681_v56, 7 }
0x1748   : > { %v3411_v24 = vadd.f32 %v3870_v21, %v3404_v23 }
0x174a   : > { %4285 = vmatmul.mubr.msk.f32.vlgmr.msra.gmra.mxu0 %vm1025_vm1, %v3411_v24 }
0x174b   : > { %4330 = vmatprep.mubr.msk.f32.mxu0 %vm4559_vm0, %v4558_v2  ;;  %4323 = vmatpush3.msra.mxu0 %v3599_v42 }
0x174c   : > { %4324 = vmatprep.subr.mxu0 %v4558_v2 }
0x174d   : > { %4325 = vmatpush3.msra.mxu0 %v3598_v44 }
0x174e   : > { %4326 = vmatprep.subr.mxu0 %v4558_v2 }
0x174f   : > { %4327 = vmatpush3.msra.mxu0 %v3597_v45 }
0x1750   : > { %4328 = vmatprep.subr.mxu0 %v4558_v2 }
0x1751   : > { %4329 = vmatpush3.msra.mxu0 %v3596_v46 }
0x180a   : > { %v3487_v28 = vpop.f32.mrf.mxu0 }
0x180b   : > { %v3488_v29 = vadd.f32 %v3871_v27, %v3487_v28 }
0x180c   : > { %v4286_v30 = vpop.f32.mrf.mxu0 }
0x180d   : > { %v3491_v31 = vmax.f32 %v3488_v29, 0.0 }
0x180f   : > { %4320 = vmatmul.mubr.f32.vlgmr.msra.gmra.mxu1 %v3491_v31 }
0x18cf   : > { %v3564_v25 = vpop.f32.mrf.mxu1 }
0x18d0   : > { %v3565_v33 = vadd.f32 %v3873_v32, %v3564_v25 }
0x18d1   : > { %v4321_v34 = vpop.f32.mrf.mxu1 }
0x18d2   : > { %v3568_v35 = vadd.f32 %v3565_v33, %v3411_v24 }
0x18d4   : > { %v3569_v36 = vsel %vm1025_vm1, %v3568_v35, 0.0 }
0x18d5   : > { %3570 = vadd.xlane.f32.xlu0 %v3569_v36 }
0x195e   : > { %v3571_v37 = vpop.xlane.xlu0 %3570 }
0x195f   : > { %v3572_v38 = vmul.f32 0.03125, %v3571_v37 }
0x1961   : > { %v3573_v39 = vsub.f32 %v3568_v35, %v3572_v38 }
0x1963   : > { %v3574_v40 = vmul.f32 %v3573_v39, %v3573_v39 }
0x1965   : > { %v3575_v41 = vsel %vm1025_vm1, %v3574_v40, 0.0 }
0x1966   : > { %3576 = vadd.xlane.f32.xlu0 %v3575_v41 }
0x19ef   : > { %v3577_v48 = vpop.xlane.xlu0 %3576 }
0x19f0   : > { %v3578_v49 = vmul.f32 0.03125, %v3577_v48 }
0x19f2   : > { %v3579_v51 = vadd.f32 1e-05, %v3578_v49 }
0x19f4   : > { %4461 = vrsqrt.f32 %v3579_v51 }
0x1a01   : > { %v4462_v52 = vpop.eup %4461 }
0x1a02   : > { %v3581_v54 = vmul.f32 %v4462_v52, %v3573_v39 }
0x1a04   : > { %v3588_v50 = vmul.f32 %v3874_v53, %v3581_v54 }
0x1a06   : > { %v3595_v55 = vadd.f32 %v3875_v43, %v3588_v50 }
0x1a08   : > { %4331 = vmatmul.mubr.msk.f32.vlgmr.msra.gmra.mxu0 %vm1025_vm1, %v3595_v55 }
0x1ac8   : > { %v3676_v59 = vpop.f32.mrf.mxu0 }
0x1ac9   : > { %v3677_v60 = vadd.f32 %v3876_v57, %v3676_v59 }
0x1aca   : > { %v4332_v22 = vpop.f32.mrf.mxu0 }
0x1acb   : > { %v3683_v62 = vsel %vm3682_vm12, 0.0, %v3677_v60 }
0x1acc   : > { %v3687_v63 = vsel %vm3684_vm13, %v3686_v61, %v3683_v62 }
0x1acd   : > { %3688 = vst [vmem:[%s1001_s6] sm:$0xff] %v3687_v63 }
0x1ace   : > { %4476 = shalt.err (!%p4473_p3)
}
0x1acf   : > { %s4477_s6 = scalar_lea.hbm %s5262_s4, 128  ;;  %s4481_s5 = scalar_lea.hbm %s4744_s27, 256 }
0x1ad0   : > { %p4478_p4 = scmp.ne.s32.totalorder %s5262_s4, %s4477_s6  ;;  %p4482_p9 = scmp.lt.s32.totalorder %s5262_s4, %s4744_s27 }
0x1ad1   : > { %p4483_p10 = scmp.lt.s32.totalorder %s4481_s5, %s4477_s6 }
0x1ad2   : > { %p4479_p7 = pnand %p4478_p4, %p4784_p5 }
0x1ad3   : > { %p4484_p11 = por %p4483_p10, %p4482_p9 }
0x1ad4   : > { %p4480_p8 = pneg %p4479_p7 }
0x1ad6   : > { %p4485_p12 = pnand %p4484_p11, %p4480_p8 }
0x1ad8   : > { %4488 = shalt.err (!%p4485_p12)
}
0x1ad9   : > { %4333 = dma.vmem_to_hbm [thread:$0]  (%p4784_p5), %s3704_s26, 128, %s5262_s4, %s3690_s8  }
0x1ada PF: > { %p4339_p13 = scmp.ge.s32.totalorder %s4523_s7, 2  ;;  %s3715_s9 = sand.u32 1, %s4511_s28  }
0x1adb   : > { %s3716_s12 = scalar_lea.sflag [#allocation3], %s3715_s9 }
0x1adc   : > { %p4336_p0 = pnand %p4339_p13, %p4788_p6 }
0x1ade   : > { %p4337_p1 = pneg %p4336_p0 }
0x1ae0   : > { %4506 = dma.done.wait (%p4337_p1), %s3716_s12, 128  }
0x1ae1   : > { %4508 = vsyncadd (%p4337_p1), %s3716_s12, 4294967168  ;;  %p75_p2 = scmp.ge.s32.totalorder %s4771_s11, 4   ;;  %s5370_s28 = smov %s4515_s1 }
0x1ae2   : > { %s5371_s1 = smov %s4519_s2  ;;  %s5372_s2 = smov %s4782_s18 }
0x1ae3   : > { %s5373_s7 = smov %s4771_s11  ;;  %77 = sbr.rel (!%p75_p2) target bundleno = 60 (0x3c), region = 221 }
0x1ae8   :  { %3721 = vsyncpa [#allocation3], 1 }
0x1ae9   :  { %3723 = vsyncpa [#allocation3 + $0x1], 1 }

</bundles_post_ra>
